<compile_context>
chip_gen: v7x
topology: tpu7x:2x2x1
jax: 0.10.0
libtpu: 0.0.40
codegen_flags: <defaults>
</compile_context>

<pallas_src>
import functools
import math

import jax
import jax.numpy as jnp
from jax.experimental import pallas as pl
from jax.experimental.pallas import tpu as pltpu

# ----------------------------- problem sizes -------------------------------
B = 2            # batch (bsz / len(vid))
T = 2            # number of frames in the video (len(img_recs))
D_AUDIO = 128    # audio feature dim (module: nn.Linear(128, 512))
D_HID = 512
D_EMB = 256      # projected prompt dim (module: nn.Linear(512, 256))
NQ = 100         # number of Mask2Former queries (audio_emb.repeat(100,1,1))
H = W = 16       # small spatial size for the stand-in pixel embeddings / masks
P = H * W        # flattened spatial (lane axis)
ALPHA = 0.25     # FocalLoss alpha
GAMMA = 2.0      # FocalLoss gamma (== 2 -> implemented as explicit square)

# class-weight values produced by one_hot_encoding's clip(1e-6, 1-1e-6):
C_HOT = 1.0 - 1e-6
C_COLD = 1e-6


# ============================ fused Pallas kernel ===========================

def _fused_frame_kernel(sqrt_ab, sqrt_1mab,          # static ddpm constants
                        cw_ref,                       # SMEM (T, 2) int32 counts
                        audio_ref, w1_ref, b1_ref, w2_ref, b2_ref,
                        pix_ref, eps_ref, tgt_ref,
                        pred_ref, loss_ref):
    t = pl.program_id(0)

    # ---- audio_proj: Linear(128,512) + ReLU + Linear(512,256) -------------
    a = audio_ref[0]                                                   # (B, 128)
    h = jnp.dot(a, w1_ref[...], preferred_element_type=jnp.float32) + b1_ref[...]
    h = jnp.maximum(h, 0.0)
    emb = jnp.dot(h, w2_ref[...],
                  preferred_element_type=jnp.float32) + b2_ref[...]    # (B, 256)

    # ---- ddpm forward diffusion on the prompt (distorted branch) ----------
    emb_dist = sqrt_ab * emb + sqrt_1mab * eps_ref[0]                  # (B, 256)

    # ---- mask head: both branches in ONE batched MXU matmul ---------------
    lhs = jnp.stack([emb, emb_dist], axis=1)                           # (B, 2, 256)
    pix = pix_ref[0]                                                   # (B, 256, P)
    base = jnp.einsum('bnd,bdp->bnp', lhs, pix,
                      preferred_element_type=jnp.float32)              # (B, 2, P)

    # ---- semantic aggregation with the NQ query axis collapsed ------------
    # The clipped one-hot weights take only two values, so the 100-query sum
    # reduces to two sigmoid terms weighted by the hot/cold counts.
    n_hot = cw_ref[t, 0].astype(jnp.float32)
    n_cold = cw_ref[t, 1].astype(jnp.float32)

    def aggregate(z):
        return (n_hot * C_HOT * jax.nn.sigmoid(C_HOT * z)
                + n_cold * C_COLD * jax.nn.sigmoid(C_COLD * z))

    pred = aggregate(base[:, 0, :])                                    # (B, P)
    pred_dist = aggregate(base[:, 1, :])                               # (B, P)

    # ---- 2*pred - pred_distorted, then FocalLoss(alpha=.25, gamma=2) ------
    x = 2.0 * pred - 1.0 * pred_dist
    tgt = tgt_ref[0]                                                   # (B, P)
    pred_ref[...] = x[None, :, :]

    # binary_cross_entropy_with_logits (stable form, per-element).
    # note: jnp.log1p(exp(-|x|)) is marginally more accurate at large |x|;
    # kept as log(1+exp) — logits here are O(1) so the difference is ~0.
    bce = jnp.maximum(x, 0.0) - x * tgt + jnp.log(1.0 + jnp.exp(-jnp.abs(x)))
    pt = jnp.exp(-bce)
    omp = 1.0 - pt
    fl = ALPHA * (omp * omp) * bce          # gamma = 2 -> explicit square
    loss_ref[...] = jnp.broadcast_to(jnp.mean(fl), (1, 1, 128)).astype(jnp.float32)


# ============================== glue (JAX) ==================================

def one_hot_encoding(class_labels):
    """class_labels: list (len T) of int arrays of labels -> (T, 100) float."""
    one_hots = []
    for labels in class_labels:
        labels = jnp.asarray(labels, dtype=jnp.int32)
        if labels.shape[0] == 1:
            oh = jnp.zeros((NQ,), jnp.float32).at[0].set(1.0)
        else:
            oh = jnp.sum(jax.nn.one_hot(labels, NQ, dtype=jnp.float32), axis=0)
        one_hots.append(jnp.clip(oh, 1e-6, 1.0 - 1e-6))
    return jnp.stack(one_hots)  # (T, NQ)


@functools.partial(jax.jit, static_argnames=("time_step",))
def pmp_avs_forward(pixel_embs, audio_recs, mask_recs, class_emb, params,
                    eps_noise, time_step=0):
    """
    pixel_embs : (T, B, D_EMB, P)  stand-in for Mask2Former pixel embeddings
    audio_recs : (B, T, D_AUDIO)
    mask_recs  : (T, B, H, W)      ground-truth masks
    class_emb  : (T, NQ)           clipped one-hot class weights
    eps_noise  : (T, B, D_EMB)     deterministic "randn_like" noise
    returns (loss_vid: (T,), vid_preds: (T, B, H, W))
    """
    w1, b1, w2, b2 = params

    audio_tf = jnp.transpose(audio_recs, (1, 0, 2))          # (T, B, 128)
    targets = mask_recs.reshape(T, B, P)                     # (T, B, P)

    # collapse the clipped one-hot class weights to hot/cold counts (int32)
    n_hot = jnp.sum(class_emb > 0.5, axis=1).astype(jnp.int32)        # (T,)
    cw_counts = jnp.stack([n_hot, NQ - n_hot], axis=1)                # (T, 2)

    # TODO(synk): closed-form stand-in for ddpm.sample_forward.
    alpha_bar = 0.9 ** (time_step + 1)
    kernel = functools.partial(_fused_frame_kernel,
                               float(math.sqrt(alpha_bar)),
                               float(math.sqrt(1.0 - alpha_bar)))

    pred, loss = pl.pallas_call(
        kernel,
        out_shape=(
            jax.ShapeDtypeStruct((T, B, P), jnp.float32),
            jax.ShapeDtypeStruct((T, 1, 128), jnp.float32),
        ),
        grid_spec=pltpu.PrefetchScalarGridSpec(
            num_scalar_prefetch=1,                 # cw_counts -> SMEM
            grid=(T,),
            in_specs=[
                pl.BlockSpec((1, B, D_AUDIO), lambda t, cw: (t, 0, 0)),
                # weights: constant block index -> DMA'd once, VMEM-resident
                pl.BlockSpec((D_AUDIO, D_HID), lambda t, cw: (0, 0)),
                pl.BlockSpec((1, D_HID), lambda t, cw: (0, 0)),
                pl.BlockSpec((D_HID, D_EMB), lambda t, cw: (0, 0)),
                pl.BlockSpec((1, D_EMB), lambda t, cw: (0, 0)),
                pl.BlockSpec((1, B, D_EMB, P), lambda t, cw: (t, 0, 0, 0)),
                pl.BlockSpec((1, B, D_EMB), lambda t, cw: (t, 0, 0)),
                pl.BlockSpec((1, B, P), lambda t, cw: (t, 0, 0)),
            ],
            out_specs=(
                pl.BlockSpec((1, B, P), lambda t, cw: (t, 0, 0)),
                pl.BlockSpec((1, 1, 128), lambda t, cw: (t, 0, 0)),
            ),
        ),
        compiler_params=pltpu.CompilerParams(
            dimension_semantics=("parallel",)),    # v7x: shard frames over TCs
    )(cw_counts, audio_tf, w1, b1, w2, b2, pixel_embs, eps_noise, targets)

    loss_vid = loss[:, 0, 0]                       # (T,)
    vid_preds = pred.reshape(T, B, H, W)
    return loss_vid, vid_preds


# ================================ main ======================================

if __name__ == "__main__":
    key = jax.random.PRNGKey(0)
    k = jax.random.split(key, 8)

    # deterministic parameters for audio_proj (Linear(128,512), Linear(512,256))
    w1 = jax.random.normal(k[0], (D_AUDIO, D_HID), jnp.float32) * 0.02
    b1 = jnp.zeros((1, D_HID), jnp.float32)
    w2 = jax.random.normal(k[1], (D_HID, D_EMB), jnp.float32) * 0.02
    b2 = jnp.zeros((1, D_EMB), jnp.float32)
    params = (w1, b1, w2, b2)

    # synthetic inputs (small shapes)
    pixel_embs = jax.random.normal(k[2], (T, B, D_EMB, P), jnp.float32) * 0.1
    audio_recs = jax.random.normal(k[3], (B, T, D_AUDIO), jnp.float32)
    mask_recs = (jax.random.uniform(k[4], (T, B, H, W)) > 0.5).astype(jnp.float32)
    eps_noise = jax.random.normal(k[5], (T, B, D_EMB), jnp.float32)

    # deterministic per-frame class labels -> (T, 100) one-hot class embedding
    class_labels = [jnp.array([3, 17, 42]), jnp.array([7])][:T]
    class_emb = one_hot_encoding(class_labels)

    loss_vid, vid_preds = pmp_avs_forward(
        pixel_embs, audio_recs, mask_recs, class_emb, params, eps_noise,
        time_step=0)
    jax.block_until_ready((loss_vid, vid_preds))

    assert loss_vid.shape == (T,)
    assert vid_preds.shape == (T, B, H, W)
    assert bool(jnp.all(jnp.isfinite(loss_vid)))
    assert bool(jnp.all(jnp.isfinite(vid_preds)))
    print("KERNEL_OK")
</pallas_src>

<mosaic_0001>
module attributes {stable_mosaic.version = 11 : i64} {
  func.func @_fused_frame_kernel(%arg0: i32, %arg1: memref<2x2xi32, #tpu.memory_space<smem>>, %arg2: memref<1x2x128xf32, #tpu.memory_space<vmem>>, %arg3: memref<128x512xf32, #tpu.memory_space<vmem>>, %arg4: memref<1x512xf32, #tpu.memory_space<vmem>>, %arg5: memref<512x256xf32, #tpu.memory_space<vmem>>, %arg6: memref<1x256xf32, #tpu.memory_space<vmem>>, %arg7: memref<1x2x256x256xf32, #tpu.memory_space<vmem>>, %arg8: memref<1x2x256xf32, #tpu.memory_space<vmem>>, %arg9: memref<1x2x256xf32, #tpu.memory_space<vmem>>, %arg10: memref<1x2x256xf32, #tpu.memory_space<vmem>>, %arg11: memref<1x1x128xf32, #tpu.memory_space<vmem>>) attributes {dimension_semantics = [#tpu.dimension_semantics<parallel>], iteration_bounds = array<i64: 2>, scalar_prefetch = 1 : i64, scratch_operands = 0 : i64, tpu.core_type = #tpu.core_type<tc>, window_params = [{transform_indices = @transform_0, window_bounds = array<i64: 1, 2, 128>}, {pipeline_mode = #tpu.pipeline_mode<synchronous>, transform_indices = @transform_1, window_bounds = array<i64: 128, 512>}, {pipeline_mode = #tpu.pipeline_mode<synchronous>, transform_indices = @transform_2, window_bounds = array<i64: 1, 512>}, {pipeline_mode = #tpu.pipeline_mode<synchronous>, transform_indices = @transform_3, window_bounds = array<i64: 512, 256>}, {pipeline_mode = #tpu.pipeline_mode<synchronous>, transform_indices = @transform_4, window_bounds = array<i64: 1, 256>}, {transform_indices = @transform_5, window_bounds = array<i64: 1, 2, 256, 256>}, {transform_indices = @transform_6, window_bounds = array<i64: 1, 2, 256>}, {transform_indices = @transform_7, window_bounds = array<i64: 1, 2, 256>}, {transform_indices = @transform_8, window_bounds = array<i64: 1, 2, 256>}, {transform_indices = @transform_9, window_bounds = array<i64: 1, 1, 128>}]} {
    %c0 = arith.constant 0 : index
    %c0_0 = arith.constant 0 : index
    %c0_1 = arith.constant 0 : index
    %0 = vector.load %arg2[%c0, %c0_0, %c0_1] : memref<1x2x128xf32, #tpu.memory_space<vmem>>, vector<1x2x128xf32>
    %1 = vector.shape_cast %0 : vector<1x2x128xf32> to vector<2x128xf32>
    %c0_2 = arith.constant 0 : index
    %c0_3 = arith.constant 0 : index
    %2 = vector.load %arg3[%c0_2, %c0_3] : memref<128x512xf32, #tpu.memory_space<vmem>>, vector<128x512xf32>
    %cst = arith.constant dense<0.000000e+00> : vector<2x512xf32>
    %3 = tpu.matmul %1, %2, %cst {dimension_numbers = #tpu.dot_dimension_numbers<[1], [0], [0], [1], [0, 0, 1, 1], [], []>} : vector<2x128xf32>, vector<128x512xf32>, vector<2x512xf32> -> vector<2x512xf32>
    %c0_4 = arith.constant 0 : index
    %c0_5 = arith.constant 0 : index
    %4 = vector.load %arg4[%c0_4, %c0_5] : memref<1x512xf32, #tpu.memory_space<vmem>>, vector<1x512xf32>
    %5 = vector.broadcast %4 : vector<1x512xf32> to vector<2x512xf32>
    %6 = arith.addf %3, %5 : vector<2x512xf32>
    %cst_6 = arith.constant 0.000000e+00 : f32
    %7 = vector.broadcast %cst_6 : f32 to vector<2x512xf32>
    %8 = arith.maximumf %6, %7 : vector<2x512xf32>
    %c0_7 = arith.constant 0 : index
    %c0_8 = arith.constant 0 : index
    %9 = vector.load %arg5[%c0_7, %c0_8] : memref<512x256xf32, #tpu.memory_space<vmem>>, vector<512x256xf32>
    %cst_9 = arith.constant dense<0.000000e+00> : vector<2x256xf32>
    %10 = tpu.matmul %8, %9, %cst_9 {dimension_numbers = #tpu.dot_dimension_numbers<[1], [0], [0], [1], [0, 0, 1, 1], [], []>} : vector<2x512xf32>, vector<512x256xf32>, vector<2x256xf32> -> vector<2x256xf32>
    %c0_10 = arith.constant 0 : index
    %c0_11 = arith.constant 0 : index
    %11 = vector.load %arg6[%c0_10, %c0_11] : memref<1x256xf32, #tpu.memory_space<vmem>>, vector<1x256xf32>
    %12 = vector.broadcast %11 : vector<1x256xf32> to vector<2x256xf32>
    %13 = arith.addf %10, %12 : vector<2x256xf32>
    %cst_12 = arith.constant 0.948683321 : f32
    %14 = vector.broadcast %cst_12 : f32 to vector<2x256xf32>
    %15 = arith.mulf %14, %13 : vector<2x256xf32>
    %c0_13 = arith.constant 0 : index
    %c0_14 = arith.constant 0 : index
    %c0_15 = arith.constant 0 : index
    %16 = vector.load %arg8[%c0_13, %c0_14, %c0_15] : memref<1x2x256xf32, #tpu.memory_space<vmem>>, vector<1x2x256xf32>
    %17 = vector.shape_cast %16 : vector<1x2x256xf32> to vector<2x256xf32>
    %cst_16 = arith.constant 0.316227764 : f32
    %18 = vector.broadcast %cst_16 : f32 to vector<2x256xf32>
    %19 = arith.mulf %18, %17 : vector<2x256xf32>
    %20 = arith.addf %15, %19 : vector<2x256xf32>
    %21 = vector.shape_cast %13 : vector<2x256xf32> to vector<2x1x256xf32>
    %22 = vector.shape_cast %20 : vector<2x256xf32> to vector<2x1x256xf32>
    %23 = tpu.concatenate %21, %22 in 1 : vector<2x1x256xf32>, vector<2x1x256xf32> -> vector<2x2x256xf32>
    %c0_17 = arith.constant 0 : index
    %c0_18 = arith.constant 0 : index
    %c0_19 = arith.constant 0 : index
    %c0_20 = arith.constant 0 : index
    %24 = vector.load %arg7[%c0_17, %c0_18, %c0_19, %c0_20] : memref<1x2x256x256xf32, #tpu.memory_space<vmem>>, vector<1x2x256x256xf32>
    %25 = vector.shape_cast %24 : vector<1x2x256x256xf32> to vector<2x256x256xf32>
    "tpu.trace_start"() <{level = 10 : i32, message = "bnd,bdp->bnp"}> : () -> ()
    %cst_21 = arith.constant dense<0.000000e+00> : vector<2x2x256xf32>
    %26 = tpu.matmul %23, %25, %cst_21 {dimension_numbers = #tpu.dot_dimension_numbers<[2], [1], [1], [2], [0, 0, 0, 1, 1, 2], [0], [0]>} : vector<2x2x256xf32>, vector<2x256x256xf32>, vector<2x2x256xf32> -> vector<2x2x256xf32>
    "tpu.trace_stop"() : () -> ()
    %27 = arith.index_cast %arg0 : i32 to index
    %c0_22 = arith.constant 0 : index
    %28 = memref.load %arg1[%27, %c0_22] : memref<2x2xi32, #tpu.memory_space<smem>>
    %29 = arith.sitofp %28 : i32 to f32
    %30 = arith.index_cast %arg0 : i32 to index
    %c1 = arith.constant 1 : index
    %31 = memref.load %arg1[%30, %c1] : memref<2x2xi32, #tpu.memory_space<smem>>
    %32 = arith.sitofp %31 : i32 to f32
    %33 = vector.extract_strided_slice %26 {offsets = [0, 0, 0], sizes = [2, 1, 256], strides = [1, 1, 1]} : vector<2x2x256xf32> to vector<2x1x256xf32>
    %34 = vector.shape_cast %33 : vector<2x1x256xf32> to vector<2x256xf32>
    %cst_23 = arith.constant 0.999998986 : f32
    %35 = arith.mulf %29, %cst_23 : f32
    %cst_24 = arith.constant 0.999998986 : f32
    %36 = vector.broadcast %cst_24 : f32 to vector<2x256xf32>
    %37 = arith.mulf %36, %34 : vector<2x256xf32>
    %38 = arith.negf %37 : vector<2x256xf32>
    %39 = math.exp %38 : vector<2x256xf32>
    %cst_25 = arith.constant 1.000000e+00 : f32
    %40 = vector.broadcast %cst_25 : f32 to vector<2x256xf32>
    %41 = arith.addf %40, %39 : vector<2x256xf32>
    %42 = arith.divf %40, %41 : vector<2x256xf32>
    %43 = vector.broadcast %35 : f32 to vector<2x256xf32>
    %44 = arith.mulf %43, %42 : vector<2x256xf32>
    %cst_26 = arith.constant 9.99999997E-7 : f32
    %45 = arith.mulf %32, %cst_26 : f32
    %cst_27 = arith.constant 9.99999997E-7 : f32
    %46 = vector.broadcast %cst_27 : f32 to vector<2x256xf32>
    %47 = arith.mulf %46, %34 : vector<2x256xf32>
    %48 = arith.negf %47 : vector<2x256xf32>
    %49 = math.exp %48 : vector<2x256xf32>
    %cst_28 = arith.constant 1.000000e+00 : f32
    %50 = vector.broadcast %cst_28 : f32 to vector<2x256xf32>
    %51 = arith.addf %50, %49 : vector<2x256xf32>
    %52 = arith.divf %50, %51 : vector<2x256xf32>
    %53 = vector.broadcast %45 : f32 to vector<2x256xf32>
    %54 = arith.mulf %53, %52 : vector<2x256xf32>
    %55 = arith.addf %44, %54 : vector<2x256xf32>
    %56 = vector.extract_strided_slice %26 {offsets = [0, 1, 0], sizes = [2, 1, 256], strides = [1, 1, 1]} : vector<2x2x256xf32> to vector<2x1x256xf32>
    %57 = vector.shape_cast %56 : vector<2x1x256xf32> to vector<2x256xf32>
    %cst_29 = arith.constant 0.999998986 : f32
    %58 = arith.mulf %29, %cst_29 : f32
    %cst_30 = arith.constant 0.999998986 : f32
    %59 = vector.broadcast %cst_30 : f32 to vector<2x256xf32>
    %60 = arith.mulf %59, %57 : vector<2x256xf32>
    %61 = arith.negf %60 : vector<2x256xf32>
    %62 = math.exp %61 : vector<2x256xf32>
    %cst_31 = arith.constant 1.000000e+00 : f32
    %63 = vector.broadcast %cst_31 : f32 to vector<2x256xf32>
    %64 = arith.addf %63, %62 : vector<2x256xf32>
    %65 = arith.divf %63, %64 : vector<2x256xf32>
    %66 = vector.broadcast %58 : f32 to vector<2x256xf32>
    %67 = arith.mulf %66, %65 : vector<2x256xf32>
    %cst_32 = arith.constant 9.99999997E-7 : f32
    %68 = arith.mulf %32, %cst_32 : f32
    %cst_33 = arith.constant 9.99999997E-7 : f32
    %69 = vector.broadcast %cst_33 : f32 to vector<2x256xf32>
    %70 = arith.mulf %69, %57 : vector<2x256xf32>
    %71 = arith.negf %70 : vector<2x256xf32>
    %72 = math.exp %71 : vector<2x256xf32>
    %cst_34 = arith.constant 1.000000e+00 : f32
    %73 = vector.broadcast %cst_34 : f32 to vector<2x256xf32>
    %74 = arith.addf %73, %72 : vector<2x256xf32>
    %75 = arith.divf %73, %74 : vector<2x256xf32>
    %76 = vector.broadcast %68 : f32 to vector<2x256xf32>
    %77 = arith.mulf %76, %75 : vector<2x256xf32>
    %78 = arith.addf %67, %77 : vector<2x256xf32>
    %cst_35 = arith.constant 2.000000e+00 : f32
    %79 = vector.broadcast %cst_35 : f32 to vector<2x256xf32>
    %80 = arith.mulf %79, %55 : vector<2x256xf32>
    %cst_36 = arith.constant 1.000000e+00 : f32
    %81 = vector.broadcast %cst_36 : f32 to vector<2x256xf32>
    %82 = arith.mulf %81, %78 : vector<2x256xf32>
    %83 = arith.subf %80, %82 : vector<2x256xf32>
    %c0_37 = arith.constant 0 : index
    %c0_38 = arith.constant 0 : index
    %c0_39 = arith.constant 0 : index
    %84 = vector.load %arg9[%c0_37, %c0_38, %c0_39] : memref<1x2x256xf32, #tpu.memory_space<vmem>>, vector<1x2x256xf32>
    %85 = vector.shape_cast %84 : vector<1x2x256xf32> to vector<2x256xf32>
    %86 = vector.shape_cast %83 : vector<2x256xf32> to vector<1x2x256xf32>
    %c0_40 = arith.constant 0 : index
    %c0_41 = arith.constant 0 : index
    %c0_42 = arith.constant 0 : index
    %87 = vector.load %arg10[%c0_40, %c0_41, %c0_42] : memref<1x2x256xf32, #tpu.memory_space<vmem>>, vector<1x2x256xf32>
    tpu.vector_store %arg10[%c0_40, %c0_41, %c0_42], %86 {strides = array<i32>} : memref<1x2x256xf32, #tpu.memory_space<vmem>>, vector<1x2x256xf32>,
    %cst_43 = arith.constant 0.000000e+00 : f32
    %88 = vector.broadcast %cst_43 : f32 to vector<2x256xf32>
    %89 = arith.maximumf %83, %88 : vector<2x256xf32>
    %90 = arith.mulf %83, %85 : vector<2x256xf32>
    %91 = arith.subf %89, %90 : vector<2x256xf32>
    %92 = math.absf %83 : vector<2x256xf32>
    %cst_44 = arith.constant 0.000000e+00 : f32
    %93 = vector.broadcast %cst_44 : f32 to vector<2x256xf32>
    %94 = arith.subf %93, %92 : vector<2x256xf32>
    %95 = math.exp %94 : vector<2x256xf32>
    %cst_45 = arith.constant 1.000000e+00 : f32
    %96 = vector.broadcast %cst_45 : f32 to vector<2x256xf32>
    %97 = arith.addf %96, %95 : vector<2x256xf32>
    %98 = math.log %97 : vector<2x256xf32>
    %99 = arith.addf %91, %98 : vector<2x256xf32>
    %cst_46 = arith.constant 0.000000e+00 : f32
    %100 = vector.broadcast %cst_46 : f32 to vector<2x256xf32>
    %101 = arith.subf %100, %99 : vector<2x256xf32>
    %102 = math.exp %101 : vector<2x256xf32>
    %cst_47 = arith.constant 1.000000e+00 : f32
    %103 = vector.broadcast %cst_47 : f32 to vector<2x256xf32>
    %104 = arith.subf %103, %102 : vector<2x256xf32>
    %105 = arith.mulf %104, %104 : vector<2x256xf32>
    %cst_48 = arith.constant 2.500000e-01 : f32
    %106 = vector.broadcast %cst_48 : f32 to vector<2x256xf32>
    %107 = arith.mulf %106, %105 : vector<2x256xf32>
    %108 = arith.mulf %107, %99 : vector<2x256xf32>
    %109 = vector.shape_cast %108 : vector<2x256xf32> to vector<1x2x256xf32>
    %cst_49 = arith.constant dense<0.000000e+00> : vector<1xf32>
    %110 = vector.multi_reduction <add>, %109, %cst_49 [1, 2] : vector<1x2x256xf32> to vector<1xf32>
    %111 = vector.shape_cast %110 : vector<1xf32> to vector<1x1x1xf32>
    %112 = vector.extract %111[0, 0, 0] : f32 from vector<1x1x1xf32>
    %cst_50 = arith.constant 5.120000e+02 : f32
    %113 = arith.divf %112, %cst_50 : f32
    %114 = vector.broadcast %113 : f32 to vector<1x1x128xf32>
    %c0_51 = arith.constant 0 : index
    %c0_52 = arith.constant 0 : index
    %c0_53 = arith.constant 0 : index
    %115 = vector.load %arg11[%c0_51, %c0_52, %c0_53] : memref<1x1x128xf32, #tpu.memory_space<vmem>>, vector<1x1x128xf32>
    tpu.vector_store %arg11[%c0_51, %c0_52, %c0_53], %114 {strides = array<i32>} : memref<1x1x128xf32, #tpu.memory_space<vmem>>, vector<1x1x128xf32>,
    return
  }
  func.func @transform_0(%arg0: i32, %arg1: memref<2x2xi32, #tpu.memory_space<smem>>) -> (i32, i32, i32) {
    %c0_i32 = arith.constant 0 : i32
    %c0_i32_0 = arith.constant 0 : i32
    %c0_i32_1 = arith.constant 0 : i32
    return %arg0, %c0_i32, %c0_i32_0 : i32, i32, i32
  }
  func.func @transform_1(%arg0: i32, %arg1: memref<2x2xi32, #tpu.memory_space<smem>>) -> (i32, i32) {
    %c0_i32 = arith.constant 0 : i32
    %c0_i32_0 = arith.constant 0 : i32
    %c0_i32_1 = arith.constant 0 : i32
    return %c0_i32, %c0_i32_0 : i32, i32
  }
  func.func @transform_2(%arg0: i32, %arg1: memref<2x2xi32, #tpu.memory_space<smem>>) -> (i32, i32) {
    %c0_i32 = arith.constant 0 : i32
    %c0_i32_0 = arith.constant 0 : i32
    %c0_i32_1 = arith.constant 0 : i32
    return %c0_i32, %c0_i32_0 : i32, i32
  }
  func.func @transform_3(%arg0: i32, %arg1: memref<2x2xi32, #tpu.memory_space<smem>>) -> (i32, i32) {
    %c0_i32 = arith.constant 0 : i32
    %c0_i32_0 = arith.constant 0 : i32
    %c0_i32_1 = arith.constant 0 : i32
    return %c0_i32, %c0_i32_0 : i32, i32
  }
  func.func @transform_4(%arg0: i32, %arg1: memref<2x2xi32, #tpu.memory_space<smem>>) -> (i32, i32) {
    %c0_i32 = arith.constant 0 : i32
    %c0_i32_0 = arith.constant 0 : i32
    %c0_i32_1 = arith.constant 0 : i32
    return %c0_i32, %c0_i32_0 : i32, i32
  }
  func.func @transform_5(%arg0: i32, %arg1: memref<2x2xi32, #tpu.memory_space<smem>>) -> (i32, i32, i32, i32) {
    %c0_i32 = arith.constant 0 : i32
    %c0_i32_0 = arith.constant 0 : i32
    %c0_i32_1 = arith.constant 0 : i32
    %c0_i32_2 = arith.constant 0 : i32
    return %arg0, %c0_i32, %c0_i32_0, %c0_i32_1 : i32, i32, i32, i32
  }
  func.func @transform_6(%arg0: i32, %arg1: memref<2x2xi32, #tpu.memory_space<smem>>) -> (i32, i32, i32) {
    %c0_i32 = arith.constant 0 : i32
    %c0_i32_0 = arith.constant 0 : i32
    %c0_i32_1 = arith.constant 0 : i32
    return %arg0, %c0_i32, %c0_i32_0 : i32, i32, i32
  }
  func.func @transform_7(%arg0: i32, %arg1: memref<2x2xi32, #tpu.memory_space<smem>>) -> (i32, i32, i32) {
    %c0_i32 = arith.constant 0 : i32
    %c0_i32_0 = arith.constant 0 : i32
    %c0_i32_1 = arith.constant 0 : i32
    return %arg0, %c0_i32, %c0_i32_0 : i32, i32, i32
  }
  func.func @transform_8(%arg0: i32, %arg1: memref<2x2xi32, #tpu.memory_space<smem>>) -> (i32, i32, i32) {
    %c0_i32 = arith.constant 0 : i32
    %c0_i32_0 = arith.constant 0 : i32
    %c0_i32_1 = arith.constant 0 : i32
    return %arg0, %c0_i32, %c0_i32_0 : i32, i32, i32
  }
  func.func @transform_9(%arg0: i32, %arg1: memref<2x2xi32, #tpu.memory_space<smem>>) -> (i32, i32, i32) {
    %c0_i32 = arith.constant 0 : i32
    %c0_i32_0 = arith.constant 0 : i32
    %c0_i32_1 = arith.constant 0 : i32
    return %arg0, %c0_i32, %c0_i32_0 : i32, i32, i32
  }
}

</mosaic_0001>

<bundles_post_ra>
// kernel: pmp_avs_forward.1
= control target key start
LH: loop header
LB: loop body
LE: loop exit
PB: predicated region body
PF: predicated region fallthrough
CT: control target
= control target key end

     0   :  { %s2878_s0 = inlined_call_operand.vmem [shape: s32[2,2], index: 0, kind: input, shape index: {}]   ;;  %s2879_s1 = inlined_call_operand.vmem [shape: f32[2,2,128], index: 1, kind: input, shape index: {}]   ;;  %s2880_s2 = inlined_call_operand.hbm [shape: f32[128,512], index: 2, kind: input, shape index: {}]   ;;  %s2881_s3 = inlined_call_operand.vmem [shape: f32[1,512], index: 3, kind: input, shape index: {}]   ;;  %s2882_s4 = inlined_call_operand.hbm [shape: f32[512,256], index: 4, kind: input, shape index: {}]   ;;  %s2883_s5 = inlined_call_operand.vmem [shape: f32[1,256], index: 5, kind: input, shape index: {}]   ;;  %s2884_s6 = inlined_call_operand.hbm [shape: f32[2,2,256,256], index: 6, kind: input, shape index: {}]   ;;  %s2885_s7 = inlined_call_operand.vmem [shape: f32[2,2,256], index: 7, kind: input, shape index: {}]   ;;  %s2886_s8 = inlined_call_operand.vmem [shape: f32[2,2,256], index: 8, kind: input, shape index: {}]   ;;  %s2887_s9 = inlined_call_operand.vmem [shape: f32[2,2,256], index: 9, kind: output, shape index: {0}]   ;;  %s2888_s10 = inlined_call_operand.vmem [shape: f32[2,1,128], index: 10, kind: output, shape index: {1}]  }
   0x1   :  { %2895 = sst [smem:[#allocation15_spill]] %s2888_s10  ;;  %s16_s15 = sshll.u32 %s2878_s0, 4  ;;  %s17_s15 = int_to_ptr.vmem [resolvable:$true] %s16_s15 }
   0x2   :  { %s2231_s16 = scalar_lea.vmem %s17_s15, 32  ;;  %p2236_p1 = scmp.lt.s32.totalorder %s17_s15, %s17_s15 }
   0x3   :  { %p2232_p0 = scmp.ne.s32.totalorder %s17_s15, %s2231_s16  ;;  %p2237_p2 = scmp.lt.s32.totalorder %s2231_s16, %s2231_s16 }
   0x5   :  { %p2238_p3 = por %p2237_p2, %p2236_p1 }
   0x7   :  { %p2239_p4 = pnand %p2238_p3, %p2232_p0 }
   0x9   :  { %2242 = shalt.err (!%p2239_p4)  }
   0xa   :  { %s2375_s17 = smov [#allocation3]  }
   0xb   :  { %19 = dma.vmem_to_smem %s17_s15, 32, %s2375_s17, [#allocation2] }
   0xc   :  { %2345 = dma.done.wait [#allocation2], 32 }
   0xd   :  { %2346 = vsyncadd [#allocation2], 4294967264 }
   0xe   :  { %21 = sfence }
   0xf   :  { %22 = vsyncpa [#allocation5], 0 }
  0x10   :  { %23 = vsyncpa [#allocation7], 0  ;;  %s2444_s18 = smov 0   ;;  %s2446_s19 = smov 0  }
  0x11   :  { %s2448_s0 = smov 0   ;;  %s2450_s20 = smov 0  }
  0x12 LB: > { %s2463_s21 = sadd.s32 4294967295, %s2373_s20   ;;  %s2466_s22 = sadd.s32 1, %s2373_s20   ;;  %s2373_s20 = sphi %s2450_s20, %s2910_s20   ;;  %s2369_s0 = sphi %s2448_s0, %s2914_s0   ;;  %s2365_s19 = sphi %s2446_s19, %s2913_s19   ;;  %s2361_s18 = sphi %s2444_s18, %s2912_s18  }
  0x13   : > { %2896 = sst [smem:[#allocation13_spill]] %s2466_s22  ;;  %s143_s23 = ssub.s32 %s2373_s20, %s2466_s22 }
  0x14   : > { %s146_s24 = sadd.s32 1, %s2369_s0  ;;  %p144_p5 = scmp.eq.s32.totalorder %s143_s23, 0 }
  0x15   : > { %p153_p6 = scmp.ne.s32.totalorder %s2369_s0, %s2365_s19  ;;  %p154_p7 = scmp.eq.s32.totalorder %s2373_s20, 0 }
  0x16   : > { %p159_p8 = scmp.ne.s32.totalorder %s2365_s19, %s2361_s18  ;;  %p2889_p10 = scmp.eq.s32.totalorder %s2463_s21, 0 }
  0x17   : > { %s2476_s25 = scalar_select %p144_p5, %s2369_s0, %s146_s24  }
  0x18   : > { %p155_p9 = por %p154_p7, %p153_p6  ;;  %p1747_p11 = scmp.ge.s32.totalorder %s2373_s20, 1 }
  0x19   : > { %2897 = sst [smem:[#allocation14_spill]] %s2476_s25  ;;  %p274_p12 = scmp.lt.s32.totalorder %s2373_s20, 3 }
  0x1a   : > { %p2483_p13 = por %p2889_p10, %p159_p8  ;;  %s2376_s28 = smov [#allocation4]  }
  0x1b   : > { %p2487_p0 = pnand %p1747_p11, %p274_p12  ;;  %s286_s29 = sshll.u32 %s2376_s28, 4  ;;  %s287_s29 = int_to_ptr.vmem [resolvable:$true] %s286_s29 }
  0x1c   : > { %s2898_s26 = scalar_select %p2483_p13, 1, 0 }
  0x1d   : > { %s2899_s27 = scalar_select %p2487_p0, 1, 0 }
  0x1e   : > { %p2117_p1 = pneg %p2487_p0  ;;  %p2130_p3 = scmp.lt.s32.totalorder %s2373_s20, 2 }
  0x1f   : > { %s2243_s14 = scalar_lea.hbm %s2880_s2, 8192 }
  0x20   : > { %p2495_p2 = pnand %p2117_p1, %p2889_p10  ;;  %p2500_p4 = pnand %p2130_p3, %p155_p9 }
  0x21   : > { %p2244_p5 = scmp.ne.s32.totalorder %s2880_s2, %s2243_s14  ;;  %p2250_p9 = scmp.lt.u32.totalorder %s2243_s14, %s2880_s2 }
  0x22   : > { %s2901_s11 = scalar_select %p2500_p4, 1, 0 }
  0x23   : > { %p2245_p6 = pneg %p2495_p2 }
  0x25   : > { %p2246_p7 = pnand %p2245_p6, %p2244_p5 }
  0x27   : > { %p2247_p8 = pneg %p2246_p7 }
  0x29   : > { %p2252_p11 = pnand %p2250_p9, %p2247_p8 }
  0x2b   : > { %2255 = shalt.err (!%p2252_p11)
}
  0x2c   : > { %s2256_s23 = scalar_lea.vmem %s287_s29, 8192  ;;  %p2264_p10 = scmp.lt.s32.totalorder %s287_s29, %s287_s29 }
  0x2d   : > { %p2257_p12 = scmp.ne.s32.totalorder %s287_s29, %s2256_s23  ;;  %p2265_p13 = scmp.lt.s32.totalorder %s2256_s23, %s2256_s23 }
  0x2f   : > { %p2259_p1 = pnand %p2257_p12, %p2245_p6  ;;  %p2266_p0 = por %p2265_p13, %p2264_p10 }
  0x31   : > { %p2260_p3 = pneg %p2259_p1 }
  0x33   : > { %p2267_p4 = pnand %p2266_p0, %p2260_p3 }
  0x35   : > { %2270 = shalt.err (!%p2267_p4)
}
  0x36   : > { %s2377_s24 = smov 512   ;;  %s2378_s28 = smov 32  }
  0x37   : > { %2120 = dma.hbm_to_vmem [thread:$0]  (!%p2495_p2), %s2880_s2, 8192, %s287_s29, [#allocation5], %s2377_s24, %s2377_s24, %s2378_s28  }
  0x38   : > { %s2379_s14 = smov [#allocation6]   ;;  %s2271_s18 = scalar_lea.hbm %s2882_s4, 16384 }
  0x39   : > { %s302_s15 = sshll.u32 %s2379_s14, 4  ;;  %p2272_p10 = scmp.ne.s32.totalorder %s2882_s4, %s2271_s18  ;;  %s303_s15 = int_to_ptr.vmem [resolvable:$true] %s302_s15 }
  0x3a   : > { %p2278_p4 = scmp.lt.u32.totalorder %s2271_s18, %s2882_s4 }
  0x3b   : > { %p2274_p13 = pnand %p2272_p10, %p2245_p6 }
  0x3d   : > { %p2275_p0 = pneg %p2274_p13 }
  0x3f   : > { %p2280_p5 = pnand %p2278_p4, %p2275_p0 }
  0x41   : > { %2283 = shalt.err (!%p2280_p5)
}
  0x42   : > { %s2284_s29 = scalar_lea.vmem %s303_s15, 16384  ;;  %p2292_p11 = scmp.lt.s32.totalorder %s303_s15, %s303_s15 }
  0x43   : > { %p2285_p7 = scmp.ne.s32.totalorder %s303_s15, %s2284_s29  ;;  %p2293_p12 = scmp.lt.s32.totalorder %s2284_s29, %s2284_s29 }
  0x45   : > { %p2287_p8 = pnand %p2285_p7, %p2245_p6  ;;  %p2294_p1 = por %p2293_p12, %p2292_p11 }
  0x47   : > { %p2288_p9 = pneg %p2287_p8 }
  0x49   : > { %p2295_p3 = pnand %p2294_p1, %p2288_p9 }
  0x4b   : > { %2298 = shalt.err (!%p2295_p3)
}
  0x4c   : > { %s2380_s25 = smov 256   ;;  %s2381_s10 = smov 16  }
  0x4d   : > { %2123 = dma.hbm_to_vmem [thread:$0]  (!%p2495_p2), %s2882_s4, 16384, %s303_s15, [#allocation7], %s2380_s25, %s2380_s25, %s2381_s10  }
  0x4e   : > { %s326_s28 = sand.u32 1, %s2373_s20   ;;  %s328_s12 = sand.u32 1, %s2369_s0  }
  0x4f   : > { %s1751_s13 = sshll.u32 %s328_s12, 10  ;;  %s1777_s14 = sshll.u32 %s2373_s20, 14 }
  0x50   : > { %s2555_s18 = scalar_lea.hbm %s2884_s6, %s1777_s14  ;;  %s330_s30 = scalar_lea.vmem [#allocation8], %s1751_s13 }
  0x51   : > { %s337_s23 = sshll.u32 %s330_s30, 4  ;;  %s2559_s29 = scalar_lea.sflag [#allocation5], %s326_s28  ;;  %s2557_s23 = int_to_ptr.vmem [resolvable:$true] %s337_s23 }
  0x52   : > { %s2299_s15 = scalar_lea.hbm %s2555_s18, 16384  ;;  %p2902_p6 = scmp.ne.s32.totalorder %s2901_s11, 0 }
  0x53   : > { %p2300_p2 = scmp.ne.s32.totalorder %s2555_s18, %s2299_s15  ;;  %s2304_s24 = scalar_lea.hbm %s2884_s6, 32768 }
  0x54   : > { %p2301_p10 = pneg %p2902_p6  ;;  %p2305_p4 = scmp.lt.u32.totalorder %s2555_s18, %s2884_s6 }
  0x55   : > { %p2306_p5 = scmp.lt.u32.totalorder %s2304_s24, %s2299_s15  ;;  %p2308_p8 = scmp.lt.u32.totalorder %s2299_s15, %s2555_s18 }
  0x56   : > { %p2302_p13 = pnand %p2301_p10, %p2300_p2 }
  0x57   : > { %p2307_p7 = por %p2306_p5, %p2305_p4 }
  0x58   : > { %p2303_p0 = pneg %p2302_p13 }
  0x59   : > { %p2309_p9 = por %p2308_p8, %p2307_p7 }
  0x5b   : > { %p2310_p11 = pnand %p2309_p9, %p2303_p0 }
  0x5d   : > { %2313 = shalt.err (!%p2310_p11)
}
  0x5e   : > { %s2314_s28 = scalar_lea.vmem %s2557_s23, 16384  ;;  %s2382_s13 = smov [#allocation8]  }
  0x5f   : > { %p2315_p12 = scmp.ne.s32.totalorder %s2557_s23, %s2314_s28  ;;  %s2319_s16 = sshll.u32 %s2382_s13, 4  ;;  %s2320_s16 = int_to_ptr.vmem [resolvable:$false] %s2319_s16 }
  0x60   : > { %s2321_s17 = scalar_lea.vmem %s2320_s16, 32768  ;;  %p2322_p2 = scmp.lt.s32.totalorder %s2557_s23, %s2320_s16 }
  0x61   : > { %p2317_p1 = pnand %p2315_p12, %p2301_p10  ;;  %p2323_p13 = scmp.lt.s32.totalorder %s2321_s17, %s2314_s28 }
  0x63   : > { %p2318_p3 = pneg %p2317_p1  ;;  %p2324_p4 = por %p2323_p13, %p2322_p2 }
  0x65   : > { %p2325_p5 = pnand %p2324_p4, %p2318_p3 }
  0x67   : > { %2328 = shalt.err (!%p2325_p5)
}
  0x68   : > { %2127 = dma.hbm_to_vmem [thread:$0]  (!%p2902_p6), %s2555_s18, 16384, %s2557_s23, %s2559_s29, %s2380_s25, %s2380_s25, %s2381_s10  }
  0x69   : > { %p2903_p10 = scmp.ne.s32.totalorder %s2899_s27, 0 }
  0x6a   : > { %p2904_p0 = scmp.eq.s32.totalorder (!%p2903_p10), %s2463_s21, 0 }
  0x6b   : > { %365 = sbr.rel (%p2903_p10) target bundleno = 1257 (0x4e9), region = 52 }
  0x72   : > { %2348 = dma.done.wait (%p2904_p0), [#allocation5], 8192   ;;  %p2905_p7 = pmov %p2904_p0 }
  0x73   : > { %p2906_p8 = pmov %p2904_p0 }
  0x74   : > { %2350 = vsyncadd (%p2905_p7), [#allocation5], 4294959104 }
  0x75   : > { %2352 = dma.done.wait (%p2906_p8), [#allocation7], 16384   ;;  %p2907_p9 = pmov %p2904_p0 }
  0x76   : > { %s375_s11 = sand.u32 1, %s2463_s21   ;;  %s377_s25 = sand.u32 1, %s2365_s19  }
  0x77   : > { %2354 = vsyncadd (%p2907_p9), [#allocation7], 4294950912  ;;  %s1757_s10 = sshll.u32 %s377_s25, 10  ;;  %s376_s27 = scalar_lea.sflag [#allocation5], %s375_s11 }
  0x78   : > { %s2602_s18 = scalar_lea.vmem [#allocation8], %s1757_s10  ;;  %p2908_p6 = scmp.ne.s32.totalorder %s2898_s26, 0 }
  0x7a   : > { %2356 = dma.done.wait (%p2908_p6), %s376_s27, 16384  }
  0x7b   : > { %2358 = vsyncadd (%p2908_p6), %s376_s27, 4294950912  ;;  %v2383_v0 = vmov 0.0   ;;  %v455_v1 = vld [vmem:[#allocation4 + $0x8] sm:$0xff]  ;;  %v454_v3 = vld [vmem:[#allocation4] sm:$0xff]  ;;  %p431_p11 = scmp.lt.s32.totalorder %s2463_s21, 1  ;;  %vm1075_vm0 = vcmask 1040384  }
  0x7c   : > { %604 = vmatprep.mubr.f32.mxu0 %v2383_v0  ;;  %675 = vmatprep.mubr.f32.mxu1 %v2383_v0  ;;  %v459_v2 = vld [vmem:[#allocation4 + $0x28] sm:$0xff]  ;;  %v458_v5 = vld [vmem:[#allocation4 + $0x20] sm:$0xff]  ;;  %v457_v28 = vld [vmem:[#allocation4 + $0x18] sm:$0xff]  ;;  %s1765_s17 = sshll.u32 %s2463_s21, 7  ;;  %vm1474_vm1 = vcmask 1041409   ;;  %vm1476_vm2 = vcmask 1043459  }
  0x7d   : > { %v1781_v4 = vpack.c.bf16 %v459_v2, %v455_v1  ;;  %v463_v6 = vld [vmem:[#allocation4 + $0x48] sm:$0xff]  ;;  %v1783_v8 = vpack.c.bf16 %v458_v5, %v454_v3  ;;  %v462_v10 = vld [vmem:[#allocation4 + $0x40] sm:$0xff]  ;;  %v461_v29 = vld [vmem:[#allocation4 + $0x38] sm:$0xff]  ;;  %s2612_s26 = scalar_select %p431_p11, %s2463_s21, 1  ;;  %vm1478_vm3 = vcmask 1045509   ;;  %vm1480_vm4 = vcmask 1047559  }
  0x7e   : > { %v467_v7 = vld [vmem:[#allocation4 + $0x68] sm:$0xff]  ;;  %v466_v11 = vld [vmem:[#allocation4 + $0x60] sm:$0xff]  ;;  %v456_v30 = vld [vmem:[#allocation4 + $0x10] sm:$0xff]  ;;  %v1813_v32 = vpack.c.bf16 %v461_v29, %v457_v28  ;;  %s1353_s11 = sadd.s32 1, %s1765_s17  ;;  %s1351_s25 = sld [smem:[#allocation3 + %s1765_s17]]  ;;  %vm1581_vm5 = vcmask 1041408  }
  0x7f   : > { %v1785_v9 = vpack.c.bf16 %v467_v7, %v463_v6  ;;  %v471_v12 = vld [vmem:[#allocation4 + $0x88] sm:$0xff]  ;;  %1782 = vmatprep.subr.bf16.mxu0 %v1781_v4  ;;  %v1787_v14 = vpack.c.bf16 %v466_v11, %v462_v10  ;;  %v470_v16 = vld [vmem:[#allocation4 + $0x80] sm:$0xff]  ;;  %v460_v33 = vld [vmem:[#allocation4 + $0x30] sm:$0xff]  ;;  %s1758_s30 = sshll.u32 %s2612_s26, 1  ;;  %s2709_s24 = sshll.u32 %s2612_s26, 2 }
  0x80   : > { %v475_v13 = vld [vmem:[#allocation4 + $0xa8] sm:$0xff]  ;;  %1784 = vmatpush1.bf16.msra.mxu0 %v1783_v8  ;;  %v474_v17 = vld [vmem:[#allocation4 + $0xa0] sm:$0xff]  ;;  %v465_v34 = vld [vmem:[#allocation4 + $0x58] sm:$0xff]  ;;  %v1815_v37 = vpack.c.bf16 %v460_v33, %v456_v30  ;;  %1814 = vmatprep.subr.bf16.mxu1 %v1813_v32  ;;  %s434_s15 = scalar_lea.vmem %s2879_s1, %s1758_s30  ;;  %s439_s28 = scalar_lea.vmem %s2885_s7, %s2709_s24 }
  0x81   : > { %1786 = vmatprep.subr.bf16.mxu0 %v1785_v9  ;;  %v1789_v15 = vpack.c.bf16 %v475_v13, %v471_v12  ;;  %v479_v18 = vld [vmem:[#allocation4 + $0xc8] sm:$0xff]  ;;  %v1791_v20 = vpack.c.bf16 %v474_v17, %v470_v16  ;;  %v478_v22 = vld [vmem:[#allocation4 + $0xc0] sm:$0xff]  ;;  %v469_v35 = vld [vmem:[#allocation4 + $0x78] sm:$0xff]  ;;  %s1354_s10 = sld [smem:[#allocation3 + %s1353_s11]]  ;;  %s449_s12 = scalar_lea.vmem %s2887_s9, %s2709_s24 }
  0x82   : > { %v483_v19 = vld [vmem:[#allocation4 + $0xe8] sm:$0xff]  ;;  %v482_v23 = vld [vmem:[#allocation4 + $0xe0] sm:$0xff]  ;;  %v1817_v38 = vpack.c.bf16 %v469_v35, %v465_v34  ;;  %v464_v39 = vld [vmem:[#allocation4 + $0x50] sm:$0xff]  ;;  %1816 = vmatpush1.bf16.msra.mxu1 %v1815_v37  ;;  %s2909_s13 = sld [smem:[#allocation15_spill]] }
  0x83   : > { %v1793_v21 = vpack.c.bf16 %v483_v19, %v479_v18  ;;  %v487_v24 = vld [vmem:[#allocation4 + $0x108] sm:$0xff]  ;;  %v486_v26 = vld [vmem:[#allocation4 + $0x100] sm:$0xff]  ;;  %v1795_v31 = vpack.c.bf16 %v482_v23, %v478_v22  ;;  %v468_v40 = vld [vmem:[#allocation4 + $0x70] sm:$0xff] }
  0x84   : > { %1788 = vmatpush1.bf16.msra.mxu0 %v1787_v14  ;;  %v491_v25 = vld [vmem:[#allocation4 + $0x128] sm:$0xff]  ;;  %v490_v27 = vld [vmem:[#allocation4 + $0x120] sm:$0xff]  ;;  %v473_v41 = vld [vmem:[#allocation4 + $0x98] sm:$0xff]  ;;  %v1819_v45 = vpack.c.bf16 %v468_v40, %v464_v39  ;;  %1818 = vmatprep.subr.bf16.mxu1 %v1817_v38  ;;  %s1352_s27 = scvt.s32.f32 %s1351_s25 }
  0x85   : > { %1790 = vmatprep.subr.bf16.mxu0 %v1789_v15  ;;  %v1797_v36 = vpack.c.bf16 %v491_v25, %v487_v24  ;;  %v495_v42 = vld [vmem:[#allocation4 + $0x148] sm:$0xff]  ;;  %v477_v44 = vld [vmem:[#allocation4 + $0xb8] sm:$0xff]  ;;  %v1799_v46 = vpack.c.bf16 %v490_v27, %v486_v26  ;;  %v494_v47 = vld [vmem:[#allocation4 + $0x140] sm:$0xff] }
  0x86   : > { %v499_v43 = vld [vmem:[#allocation4 + $0x168] sm:$0xff]  ;;  %v1821_v48 = vpack.c.bf16 %v477_v44, %v473_v41  ;;  %v472_v49 = vld [vmem:[#allocation4 + $0x90] sm:$0xff]  ;;  %v498_v52 = vld [vmem:[#allocation4 + $0x160] sm:$0xff]  ;;  %1820 = vmatpush1.bf16.msra.mxu1 %v1819_v45  ;;  %s1356_s21 = smul.f32 0.999999, %s1352_s27 }
  0x87   : > { %v476_v50 = vld [vmem:[#allocation4 + $0xb0] sm:$0xff]  ;;  %v1801_v51 = vpack.c.bf16 %v499_v43, %v495_v42  ;;  %v481_v53 = vld [vmem:[#allocation4 + $0xd8] sm:$0xff]  ;;  %v503_v55 = vld [vmem:[#allocation4 + $0x188] sm:$0xff]  ;;  %v1803_v58 = vpack.c.bf16 %v498_v52, %v494_v47 }
  0x88   : > { %1792 = vmatpush1.bf16.msra.mxu0 %v1791_v20  ;;  %v485_v54 = vld [vmem:[#allocation4 + $0xf8] sm:$0xff]  ;;  %v507_v56 = vld [vmem:[#allocation4 + $0x1a8] sm:$0xff]  ;;  %v1823_v57 = vpack.c.bf16 %v476_v50, %v472_v49  ;;  %v502_v59 = vld [vmem:[#allocation4 + $0x180] sm:$0xff]  ;;  %1822 = vmatprep.subr.bf16.mxu1 %v1821_v48  ;;  %s452_s16 = scalar_lea.vmem %s2909_s13, %s2612_s26 }
  0x89   : > { %1794 = vmatprep.subr.bf16.mxu0 %v1793_v21  ;;  %v1825_v60 = vpack.c.bf16 %v485_v54, %v481_v53  ;;  %v480_v61 = vld [vmem:[#allocation4 + $0xd0] sm:$0xff]  ;;  %v1805_v63 = vpack.c.bf16 %v507_v56, %v503_v55  ;;  %v506_v0 = vld [vmem:[#allocation4 + $0x1a0] sm:$0xff]  ;;  %v489_v1 = vld [vmem:[#allocation4 + $0x118] sm:$0xff] }
  0x8a   : > { %v484_v62 = vld [vmem:[#allocation4 + $0xf0] sm:$0xff]  ;;  %v493_v2 = vld [vmem:[#allocation4 + $0x138] sm:$0xff]  ;;  %v511_v3 = vld [vmem:[#allocation4 + $0x1c8] sm:$0xff]  ;;  %1824 = vmatpush1.bf16.msra.mxu1 %v1823_v57  ;;  %v1807_v6 = vpack.c.bf16 %v506_v0, %v502_v59 }
  0x8b   : > { %v515_v4 = vld [vmem:[#allocation4 + $0x1e8] sm:$0xff]  ;;  %v1827_v5 = vpack.c.bf16 %v484_v62, %v480_v61  ;;  %v510_v7 = vld [vmem:[#allocation4 + $0x1c0] sm:$0xff]  ;;  %1826 = vmatprep.subr.bf16.mxu1 %v1825_v60  ;;  %v1829_v8 = vpack.c.bf16 %v493_v2, %v489_v1  ;;  %v488_v9 = vld [vmem:[#allocation4 + $0x110] sm:$0xff] }
  0x8c   : > { %1796 = vmatpush1.bf16.msra.mxu0 %v1795_v31  ;;  %v492_v10 = vld [vmem:[#allocation4 + $0x130] sm:$0xff]  ;;  %v1809_v11 = vpack.c.bf16 %v515_v4, %v511_v3  ;;  %v514_v12 = vld [vmem:[#allocation4 + $0x1e0] sm:$0xff]  ;;  %v497_v13 = vld [vmem:[#allocation4 + $0x158] sm:$0xff] }
  0x8d   : > { %1798 = vmatprep.subr.bf16.mxu0 %v1797_v36  ;;  %v501_v14 = vld [vmem:[#allocation4 + $0x178] sm:$0xff]  ;;  %v687_v15 = vld [vmem:[#allocation6 + $0x8] sm:$0xff]  ;;  %v1831_v17 = vpack.c.bf16 %v492_v10, %v488_v9  ;;  %v1811_v18 = vpack.c.bf16 %v514_v12, %v510_v7  ;;  %v496_v20 = vld [vmem:[#allocation4 + $0x150] sm:$0xff] }
  0x8e   : > { %v689_v16 = vld [vmem:[#allocation6 + $0x18] sm:$0xff]  ;;  %1828 = vmatpush1.bf16.msra.mxu1 %v1827_v5  ;;  %v1833_v19 = vpack.c.bf16 %v501_v14, %v497_v13  ;;  %v500_v21 = vld [vmem:[#allocation4 + $0x170] sm:$0xff]  ;;  %v686_v25 = vld [vmem:[#allocation6] sm:$0xff] }
  0x8f   : > { %1830 = vmatprep.subr.bf16.mxu1 %v1829_v8  ;;  %v505_v22 = vld [vmem:[#allocation4 + $0x198] sm:$0xff]  ;;  %v1845_v24 = vpack.c.bf16 %v689_v16, %v687_v15  ;;  %v688_v26 = vld [vmem:[#allocation6 + $0x10] sm:$0xff]  ;;  %v691_v27 = vld [vmem:[#allocation6 + $0x28] sm:$0xff]  ;;  %v1835_v30 = vpack.c.bf16 %v500_v21, %v496_v20 }
  0x90   : > { %1800 = vmatpush1.bf16.msra.mxu0 %v1799_v46  ;;  %v509_v23 = vld [vmem:[#allocation4 + $0x1b8] sm:$0xff]  ;;  %v453_v29 = vld [vmem:[%s434_s15] sm:$0x3]  ;;  %v504_v32 = vld [vmem:[#allocation4 + $0x190] sm:$0xff]  ;;  %v1847_v35 = vpack.c.bf16 %v688_v26, %v686_v25  ;;  %s444_s15 = scalar_lea.vmem %s2886_s8, %s2709_s24 }
  0x91   : > { %1802 = vmatprep.subr.bf16.mxu0 %v1801_v51  ;;  %v693_v28 = vld [vmem:[#allocation6 + $0x38] sm:$0xff]  ;;  %v1837_v31 = vpack.c.bf16 %v509_v23, %v505_v22  ;;  %v508_v33 = vld [vmem:[#allocation4 + $0x1b0] sm:$0xff]  ;;  %v690_v38 = vld [vmem:[#allocation6 + $0x20] sm:$0xff] }
  0x92   : > { %1832 = vmatpush1.bf16.msra.mxu1 %v1831_v17  ;;  %v513_v34 = vld [vmem:[#allocation4 + $0x1d8] sm:$0xff]  ;;  %v1849_v37 = vpack.c.bf16 %v693_v28, %v691_v27  ;;  %v692_v39 = vld [vmem:[#allocation6 + $0x30] sm:$0xff]  ;;  %v695_v40 = vld [vmem:[#allocation6 + $0x48] sm:$0xff]  ;;  %v1839_v42 = vpack.c.bf16 %v508_v33, %v504_v32 }
  0x93   : > { %1834 = vmatprep.subr.bf16.mxu1 %v1833_v19  ;;  %v517_v36 = vld [vmem:[#allocation4 + $0x1f8] sm:$0xff]  ;;  %v512_v44 = vld [vmem:[#allocation4 + $0x1d0] sm:$0xff]  ;;  %v1851_v46 = vpack.c.bf16 %v692_v39, %v690_v38  ;;  %v694_v48 = vld [vmem:[#allocation6 + $0x40] sm:$0xff] }
  0x94   : > { %1804 = vmatpush1.bf16.msra.mxu0 %v1803_v58  ;;  %v697_v41 = vld [vmem:[#allocation6 + $0x58] sm:$0xff]  ;;  %v1841_v43 = vpack.c.bf16 %v517_v36, %v513_v34  ;;  %v516_v45 = vld [vmem:[#allocation4 + $0x1f0] sm:$0xff]  ;;  %v699_v50 = vld [vmem:[#allocation6 + $0x68] sm:$0xff] }
  0x95   : > { %1806 = vmatprep.subr.bf16.mxu0 %v1805_v63  ;;  %v1853_v47 = vpack.c.bf16 %v697_v41, %v695_v40  ;;  %v696_v49 = vld [vmem:[#allocation6 + $0x50] sm:$0xff]  ;;  %v701_v51 = vld [vmem:[#allocation6 + $0x78] sm:$0xff]  ;;  %v1843_v52 = vpack.c.bf16 %v516_v45, %v512_v44  ;;  %v698_v55 = vld [vmem:[#allocation6 + $0x60] sm:$0xff] }
  0x96   : > { %1836 = vmatpush1.bf16.msra.mxu1 %v1835_v30  ;;  %v1855_v53 = vpack.c.bf16 %v696_v49, %v694_v48  ;;  %v1857_v54 = vpack.c.bf16 %v701_v51, %v699_v50  ;;  %v700_v56 = vld [vmem:[#allocation6 + $0x70] sm:$0xff]  ;;  %v703_v57 = vld [vmem:[#allocation6 + $0x88] sm:$0xff]  ;;  %v705_v58 = vld [vmem:[#allocation6 + $0x98] sm:$0xff] }
  0x97   : > { %1838 = vmatprep.subr.bf16.mxu1 %v1837_v31  ;;  %v1859_v59 = vpack.c.bf16 %v700_v56, %v698_v55  ;;  %v1861_v60 = vpack.c.bf16 %v705_v58, %v703_v57  ;;  %v702_v61 = vld [vmem:[#allocation6 + $0x80] sm:$0xff]  ;;  %v704_v62 = vld [vmem:[#allocation6 + $0x90] sm:$0xff]  ;;  %v707_v63 = vld [vmem:[#allocation6 + $0xa8] sm:$0xff] }
  0x98   : > { %1808 = vmatpush1.bf16.msra.mxu0 %v1807_v6  ;;  %v709_v0 = vld [vmem:[#allocation6 + $0xb8] sm:$0xff]  ;;  %v1863_v1 = vpack.c.bf16 %v704_v62, %v702_v61  ;;  %v706_v3 = vld [vmem:[#allocation6 + $0xa0] sm:$0xff]  ;;  %v708_v4 = vld [vmem:[#allocation6 + $0xb0] sm:$0xff] }
  0x99   : > { %1810 = vmatprep.subr.bf16.mxu0 %v1809_v11  ;;  %v1865_v2 = vpack.c.bf16 %v709_v0, %v707_v63  ;;  %v711_v5 = vld [vmem:[#allocation6 + $0xc8] sm:$0xff]  ;;  %v713_v6 = vld [vmem:[#allocation6 + $0xd8] sm:$0xff]  ;;  %v1867_v7 = vpack.c.bf16 %v708_v4, %v706_v3  ;;  %v710_v9 = vld [vmem:[#allocation6 + $0xc0] sm:$0xff] }
  0x9a   : > { %1840 = vmatpush1.bf16.msra.mxu1 %v1839_v42  ;;  %v1869_v8 = vpack.c.bf16 %v713_v6, %v711_v5  ;;  %v712_v10 = vld [vmem:[#allocation6 + $0xd0] sm:$0xff]  ;;  %v715_v11 = vld [vmem:[#allocation6 + $0xe8] sm:$0xff]  ;;  %v717_v12 = vld [vmem:[#allocation6 + $0xf8] sm:$0xff] }
  0x9b   : > { %1842 = vmatprep.subr.bf16.mxu1 %v1841_v43  ;;  %v1871_v13 = vpack.c.bf16 %v712_v10, %v710_v9  ;;  %v1873_v14 = vpack.c.bf16 %v717_v12, %v715_v11  ;;  %v714_v15 = vld [vmem:[#allocation6 + $0xe0] sm:$0xff]  ;;  %v716_v16 = vld [vmem:[#allocation6 + $0xf0] sm:$0xff]  ;;  %v719_v17 = vld [vmem:[#allocation6 + $0x108] sm:$0xff] }
  0x9c   : > { %1812 = vmatpush1.bf16.msra.mxu0 %v1811_v18  ;;  %v721_v18 = vld [vmem:[#allocation6 + $0x118] sm:$0xff]  ;;  %v1875_v19 = vpack.c.bf16 %v716_v16, %v714_v15  ;;  %v718_v21 = vld [vmem:[#allocation6 + $0x100] sm:$0xff]  ;;  %v720_v22 = vld [vmem:[#allocation6 + $0x110] sm:$0xff] }
  0x9d   : > { %1846 = vmatprep.subr.bf16.mxu0 %v1845_v24  ;;  %v1877_v20 = vpack.c.bf16 %v721_v18, %v719_v17  ;;  %v723_v23 = vld [vmem:[#allocation6 + $0x128] sm:$0xff]  ;;  %v725_v24 = vld [vmem:[#allocation6 + $0x138] sm:$0xff]  ;;  %v1879_v25 = vpack.c.bf16 %v720_v22, %v718_v21  ;;  %v722_v27 = vld [vmem:[#allocation6 + $0x120] sm:$0xff] }
  0x9e   : > { %1844 = vmatpush1.bf16.msra.mxu1 %v1843_v52  ;;  %v1881_v26 = vpack.c.bf16 %v725_v24, %v723_v23  ;;  %v724_v28 = vld [vmem:[#allocation6 + $0x130] sm:$0xff]  ;;  %v729_v30 = vld [vmem:[#allocation6 + $0x158] sm:$0xff]  ;;  %v726_v33 = vld [vmem:[#allocation6 + $0x140] sm:$0xff] }
  0x9f   : > { %605 = vmatmul.mubr.f32.vlgmr.msra.gmra.mrb[0].mxu0 %v453_v29  ;;  %v1883_v31 = vpack.c.bf16 %v724_v28, %v722_v27  ;;  %v728_v34 = vld [vmem:[#allocation6 + $0x150] sm:$0xff]  ;;  %v733_v36 = vld [vmem:[#allocation6 + $0x178] sm:$0xff]  ;;  %v730_v39 = vld [vmem:[#allocation6 + $0x160] sm:$0xff] }
  0xa0   : > { %1848 = vmatpush1.bf16.msra.mxu0 %v1847_v35  ;;  %v731_v35 = vld [vmem:[#allocation6 + $0x168] sm:$0xff]  ;;  %v732_v40 = vld [vmem:[#allocation6 + $0x170] sm:$0xff]  ;;  %v737_v42 = vld [vmem:[#allocation6 + $0x198] sm:$0xff] }
  0xa1   : > { %1850 = vmatprep.subr.bf16.mxu0 %v1849_v37  ;;  %676 = vmatmul.mubr.f32.vlgmr.msra.gmra.mrb[0].mxu1 %v453_v29  ;;  %v727_v29 = vld [vmem:[#allocation6 + $0x148] sm:$0xff]  ;;  %v1887_v37 = vpack.c.bf16 %v728_v34, %v726_v33  ;;  %v1889_v38 = vpack.c.bf16 %v733_v36, %v731_v35  ;;  %v1891_v43 = vpack.c.bf16 %v732_v40, %v730_v39  ;;  %v734_v45 = vld [vmem:[#allocation6 + $0x180] sm:$0xff]  ;;  %v741_v48 = vld [vmem:[#allocation6 + $0x1b8] sm:$0xff] }
  0xa2   : > { %v1885_v32 = vpack.c.bf16 %v729_v30, %v727_v29  ;;  %v735_v41 = vld [vmem:[#allocation6 + $0x188] sm:$0xff]  ;;  %v738_v51 = vld [vmem:[#allocation6 + $0x1a0] sm:$0xff]  ;;  %v740_v52 = vld [vmem:[#allocation6 + $0x1b0] sm:$0xff] }
  0xa3   : > { %v1893_v44 = vpack.c.bf16 %v737_v42, %v735_v41  ;;  %v1899_v55 = vpack.c.bf16 %v740_v52, %v738_v51  ;;  %v742_v57 = vld [vmem:[#allocation6 + $0x1c0] sm:$0xff]  ;;  %v744_v58 = vld [vmem:[#allocation6 + $0x1d0] sm:$0xff]  ;;  %v749_v61 = vld [vmem:[#allocation6 + $0x1f8] sm:$0xff] }
  0xa4   : > { %1852 = vmatpush1.bf16.msra.mxu0 %v1851_v46  ;;  %v736_v46 = vld [vmem:[#allocation6 + $0x190] sm:$0xff]  ;;  %v746_v63 = vld [vmem:[#allocation6 + $0x1e0] sm:$0xff]  ;;  %v753_v3 = vld [vmem:[#allocation6 + $0x218] sm:$0xff] }
  0xa5   : > { %1854 = vmatprep.subr.bf16.mxu0 %v1853_v47  ;;  %v739_v47 = vld [vmem:[#allocation6 + $0x1a8] sm:$0xff]  ;;  %v1895_v49 = vpack.c.bf16 %v736_v46, %v734_v45  ;;  %v748_v0 = vld [vmem:[#allocation6 + $0x1f0] sm:$0xff]  ;;  %v1083_v6 = vld [vmem:[%s2602_s18 + $0x18] sm:$0xff] }
  0xa6   : > { %v1897_v50 = vpack.c.bf16 %v741_v48, %v739_v47  ;;  %v1081_v5 = vld [vmem:[%s2602_s18 + $0x8] sm:$0xff]  ;;  %v1082_v9 = vld [vmem:[%s2602_s18 + $0x10] sm:$0xff]  ;;  %v1087_v11 = vld [vmem:[%s2602_s18 + $0x38] sm:$0xff] }
  0xa7   : > { %v1085_v10 = vld [vmem:[%s2602_s18 + $0x28] sm:$0xff]  ;;  %v1086_v15 = vld [vmem:[%s2602_s18 + $0x30] sm:$0xff]  ;;  %v1091_v17 = vld [vmem:[%s2602_s18 + $0x58] sm:$0xff] }
  0xa8   : > { %1856 = vmatpush1.bf16.msra.mxu0 %v1855_v53  ;;  %v743_v53 = vld [vmem:[#allocation6 + $0x1c8] sm:$0xff]  ;;  %v1090_v21 = vld [vmem:[%s2602_s18 + $0x50] sm:$0xff]  ;;  %v1095_v23 = vld [vmem:[%s2602_s18 + $0x78] sm:$0xff] }
  0xa9   : > { %1858 = vmatprep.subr.bf16.mxu0 %v1857_v54  ;;  %v745_v54 = vld [vmem:[#allocation6 + $0x1d8] sm:$0xff]  ;;  %v1089_v16 = vld [vmem:[%s2602_s18 + $0x48] sm:$0xff]  ;;  %v1094_v27 = vld [vmem:[%s2602_s18 + $0x70] sm:$0xff] }
  0xaa   : > { %v1901_v56 = vpack.c.bf16 %v745_v54, %v743_v53  ;;  %v1093_v22 = vld [vmem:[%s2602_s18 + $0x68] sm:$0xff]  ;;  %v1099_v29 = vld [vmem:[%s2602_s18 + $0x98] sm:$0xff]  ;;  %v1098_v33 = vld [vmem:[%s2602_s18 + $0x90] sm:$0xff] }
  0xab   : > { %v1097_v28 = vld [vmem:[%s2602_s18 + $0x88] sm:$0xff]  ;;  %v1103_v35 = vld [vmem:[%s2602_s18 + $0xb8] sm:$0xff]  ;;  %v1102_v39 = vld [vmem:[%s2602_s18 + $0xb0] sm:$0xff] }
  0xac   : > { %1860 = vmatpush1.bf16.msra.mxu0 %v1859_v59  ;;  %v1903_v59 = vpack.c.bf16 %v744_v58, %v742_v57  ;;  %v1101_v34 = vld [vmem:[%s2602_s18 + $0xa8] sm:$0xff]  ;;  %v1107_v41 = vld [vmem:[%s2602_s18 + $0xd8] sm:$0xff]  ;;  %v1106_v45 = vld [vmem:[%s2602_s18 + $0xd0] sm:$0xff] }
  0xad   : > { %1862 = vmatprep.subr.bf16.mxu0 %v1861_v60  ;;  %v747_v60 = vld [vmem:[#allocation6 + $0x1e8] sm:$0xff]  ;;  %v1111_v47 = vld [vmem:[%s2602_s18 + $0xf8] sm:$0xff]  ;;  %v1110_v51 = vld [vmem:[%s2602_s18 + $0xf0] sm:$0xff] }
  0xae   : > { %v1905_v62 = vpack.c.bf16 %v749_v61, %v747_v60  ;;  %v1105_v40 = vld [vmem:[%s2602_s18 + $0xc8] sm:$0xff]  ;;  %v1115_v53 = vld [vmem:[%s2602_s18 + $0x118] sm:$0xff]  ;;  %v1114_v57 = vld [vmem:[%s2602_s18 + $0x110] sm:$0xff] }
  0xaf   : > { %v1109_v46 = vld [vmem:[%s2602_s18 + $0xe8] sm:$0xff] }
  0xb0   : > { %1864 = vmatpush1.bf16.msra.mxu0 %v1863_v1  ;;  %v1907_v1 = vpack.c.bf16 %v748_v0, %v746_v63  ;;  %v1113_v52 = vld [vmem:[%s2602_s18 + $0x108] sm:$0xff]  ;;  %v1118_v63 = vld [vmem:[%s2602_s18 + $0x130] sm:$0xff] }
  0xb1   : > { %1866 = vmatprep.subr.bf16.mxu0 %v1865_v2  ;;  %v751_v2 = vld [vmem:[#allocation6 + $0x208] sm:$0xff] }
  0xb2   : > { %v1909_v4 = vpack.c.bf16 %v753_v3, %v751_v2  ;;  %v1117_v58 = vld [vmem:[%s2602_s18 + $0x128] sm:$0xff] }
  0xb3   : > { %v1121_v0 = vld [vmem:[%s2602_s18 + $0x148] sm:$0xff] }
  0xb4   : > { %1868 = vmatpush1.bf16.msra.mxu0 %v1867_v7  ;;  %v1080_v7 = vld [vmem:[%s2602_s18] sm:$0xff] }
  0xb5   : > { %1870 = vmatprep.subr.bf16.mxu0 %v1869_v8  ;;  %v1973_v8 = vpack.c.bf16 %v1083_v6, %v1081_v5  ;;  %v1975_v12 = vpack.c.bf16 %v1082_v9, %v1080_v7  ;;  %v1122_v5 = vld [vmem:[%s2602_s18 + $0x150] sm:$0xff]  ;;  %v1125_v6 = vld [vmem:[%s2602_s18 + $0x168] sm:$0xff]  ;;  %v1127_v7 = vld [vmem:[%s2602_s18 + $0x178] sm:$0xff] }
  0xb6   : > { %v2017_v9 = vpack.c.bf16 %v1127_v7, %v1125_v6  ;;  %v779_v6 = vld [vmem:[#allocation6 + $0x2e8] sm:$0xff]  ;;  %v781_v7 = vld [vmem:[#allocation6 + $0x2f8] sm:$0xff] }
  0xb7   : > { %1974 = vmatprep.subr.bf16.mxu1 %v1973_v8 }
  0xb8   : > { %1872 = vmatpush1.bf16.msra.mxu0 %v1871_v13  ;;  %v1977_v13 = vpack.c.bf16 %v1087_v11, %v1085_v10  ;;  %1976 = vmatpush1.bf16.msra.mxu1 %v1975_v12  ;;  %v1124_v10 = vld [vmem:[%s2602_s18 + $0x160] sm:$0xff]  ;;  %v1126_v11 = vld [vmem:[%s2602_s18 + $0x170] sm:$0xff]  ;;  %v520_v12 = vlaneseq }
  0xb9   : > { %1874 = vmatprep.subr.bf16.mxu0 %v1873_v14  ;;  %v1084_v14 = vld [vmem:[%s2602_s18 + $0x20] sm:$0xff] }
  0xba   : > { %v1979_v18 = vpack.c.bf16 %v1086_v15, %v1084_v14  ;;  %1978 = vmatprep.subr.bf16.mxu1 %v1977_v13  ;;  %v2019_v13 = vpack.c.bf16 %v1126_v11, %v1124_v10  ;;  %v2666_v14 = vshrl.u32 %v520_v12, 7  ;;  %v778_v10 = vld [vmem:[#allocation6 + $0x2e0] sm:$0xff]  ;;  %v780_v11 = vld [vmem:[#allocation6 + $0x2f0] sm:$0xff]  ;;  %v783_v12 = vld [vmem:[#allocation6 + $0x308] sm:$0xff] }
  0xbc   : > { %1876 = vmatpush1.bf16.msra.mxu0 %v1875_v19  ;;  %v1981_v19 = vpack.c.bf16 %v1091_v17, %v1089_v16  ;;  %1980 = vmatpush1.bf16.msra.mxu1 %v1979_v18  ;;  %v2669_v15 = vsub.s32 0, %v2666_v14  ;;  %v2674_v16 = vld [vmem:[%s2881_s3] sm:$0xf]  ;;  %v2677_v17 = vsub.s32 1, %v2666_v14 }
  0xbd   : > { %1878 = vmatprep.subr.bf16.mxu0 %v1877_v20  ;;  %v1088_v20 = vld [vmem:[%s2602_s18 + $0x40] sm:$0xff] }
  0xbe   : > { %v1983_v24 = vpack.c.bf16 %v1090_v21, %v1088_v20  ;;  %1982 = vmatprep.subr.bf16.mxu1 %v1981_v19  ;;  %v523_v18 = vrot.slane %v2674_v16, %v2669_v15  ;;  %v527_v19 = vrot.slane %v2674_v16, %v2677_v17 }
  0xc0   : > { %1880 = vmatpush1.bf16.msra.mxu0 %v1879_v25  ;;  %v1985_v25 = vpack.c.bf16 %v1095_v23, %v1093_v22  ;;  %1984 = vmatpush1.bf16.msra.mxu1 %v1983_v24  ;;  %v750_v23 = vld [vmem:[#allocation6 + $0x200] sm:$0xff]  ;;  %v752_v24 = vld [vmem:[#allocation6 + $0x210] sm:$0xff] }
  0xc1   : > { %1882 = vmatprep.subr.bf16.mxu0 %v1881_v26  ;;  %v1092_v26 = vld [vmem:[%s2602_s18 + $0x60] sm:$0xff] }
  0xc2   : > { %v1987_v30 = vpack.c.bf16 %v1094_v27, %v1092_v26  ;;  %1986 = vmatprep.subr.bf16.mxu1 %v1985_v25  ;;  %v755_v26 = vld [vmem:[#allocation6 + $0x228] sm:$0xff]  ;;  %v757_v27 = vld [vmem:[#allocation6 + $0x238] sm:$0xff] }
  0xc4   : > { %1884 = vmatpush1.bf16.msra.mxu0 %v1883_v31  ;;  %v1989_v31 = vpack.c.bf16 %v1099_v29, %v1097_v28  ;;  %1988 = vmatpush1.bf16.msra.mxu1 %v1987_v30  ;;  %v1911_v29 = vpack.c.bf16 %v752_v24, %v750_v23  ;;  %v789_v23 = vld [vmem:[#allocation6 + $0x338] sm:$0xff] }
  0xc5   : > { %1886 = vmatprep.subr.bf16.mxu0 %v1885_v32  ;;  %v1096_v32 = vld [vmem:[%s2602_s18 + $0x80] sm:$0xff] }
  0xc6   : > { %v1991_v36 = vpack.c.bf16 %v1098_v33, %v1096_v32  ;;  %1990 = vmatprep.subr.bf16.mxu1 %v1989_v31  ;;  %v1913_v31 = vpack.c.bf16 %v757_v27, %v755_v26  ;;  %v754_v32 = vld [vmem:[#allocation6 + $0x220] sm:$0xff]  ;;  %v756_v33 = vld [vmem:[#allocation6 + $0x230] sm:$0xff] }
  0xc7   : > { %v786_v26 = vld [vmem:[#allocation6 + $0x320] sm:$0xff]  ;;  %v788_v27 = vld [vmem:[#allocation6 + $0x330] sm:$0xff] }
  0xc8   : > { %1888 = vmatpush1.bf16.msra.mxu0 %v1887_v37  ;;  %v1993_v37 = vpack.c.bf16 %v1103_v35, %v1101_v34  ;;  %1992 = vmatpush1.bf16.msra.mxu1 %v1991_v36  ;;  %v534_v34 = vsub.s32 3, %v2666_v14  ;;  %v759_v35 = vld [vmem:[#allocation6 + $0x248] sm:$0xff]  ;;  %v761_v36 = vld [vmem:[#allocation6 + $0x258] sm:$0xff] }
  0xc9   : > { %1890 = vmatprep.subr.bf16.mxu0 %v1889_v38  ;;  %v1100_v38 = vld [vmem:[%s2602_s18 + $0xa0] sm:$0xff] }
  0xca   : > { %v1995_v42 = vpack.c.bf16 %v1102_v39, %v1100_v38  ;;  %1994 = vmatprep.subr.bf16.mxu1 %v1993_v37  ;;  %v1915_v37 = vpack.c.bf16 %v756_v33, %v754_v32  ;;  %v1917_v38 = vpack.c.bf16 %v761_v36, %v759_v35  ;;  %v758_v39 = vld [vmem:[#allocation6 + $0x240] sm:$0xff]  ;;  %v792_v33 = vld [vmem:[#allocation6 + $0x350] sm:$0xff]  ;;  %v797_v35 = vld [vmem:[#allocation6 + $0x378] sm:$0xff] }
  0xcb   : > { %v790_v32 = vld [vmem:[#allocation6 + $0x340] sm:$0xff] }
  0xcc   : > { %1892 = vmatpush1.bf16.msra.mxu0 %v1891_v43  ;;  %v1997_v43 = vpack.c.bf16 %v1107_v41, %v1105_v40  ;;  %1996 = vmatpush1.bf16.msra.mxu1 %v1995_v42  ;;  %v760_v40 = vld [vmem:[#allocation6 + $0x250] sm:$0xff]  ;;  %v535_v41 = vrot.slane %v2674_v16, %v534_v34  ;;  %v763_v42 = vld [vmem:[#allocation6 + $0x268] sm:$0xff]  ;;  %v1951_v36 = vpack.c.bf16 %v792_v33, %v790_v32  ;;  %v1147_v33 = vld [vmem:[%s2602_s18 + $0x218] sm:$0xff] }
  0xcd   : > { %1894 = vmatprep.subr.bf16.mxu0 %v1893_v44  ;;  %v1104_v44 = vld [vmem:[%s2602_s18 + $0xc0] sm:$0xff]  ;;  %v795_v34 = vld [vmem:[#allocation6 + $0x368] sm:$0xff] }
  0xce   : > { %v1999_v48 = vpack.c.bf16 %v1106_v45, %v1104_v44  ;;  %1998 = vmatprep.subr.bf16.mxu1 %v1997_v43  ;;  %v765_v43 = vld [vmem:[#allocation6 + $0x278] sm:$0xff]  ;;  %v1919_v45 = vpack.c.bf16 %v760_v40, %v758_v39  ;;  %v796_v39 = vld [vmem:[#allocation6 + $0x370] sm:$0xff]  ;;  %v799_v40 = vld [vmem:[#allocation6 + $0x388] sm:$0xff] }
  0xcf   : > { %v1145_v32 = vld [vmem:[%s2602_s18 + $0x208] sm:$0xff] }
  0xd0   : > { %1896 = vmatpush1.bf16.msra.mxu0 %v1895_v49  ;;  %v2001_v49 = vpack.c.bf16 %v1111_v47, %v1109_v46  ;;  %2000 = vmatpush1.bf16.msra.mxu1 %v1999_v48  ;;  %v1921_v47 = vpack.c.bf16 %v765_v43, %v763_v42  ;;  %v762_v48 = vld [vmem:[#allocation6 + $0x260] sm:$0xff] }
  0xd1   : > { %1898 = vmatprep.subr.bf16.mxu0 %v1897_v50  ;;  %v1108_v50 = vld [vmem:[%s2602_s18 + $0xe0] sm:$0xff] }
  0xd2   : > { %v2003_v54 = vpack.c.bf16 %v1110_v51, %v1108_v50  ;;  %2002 = vmatprep.subr.bf16.mxu1 %v2001_v49  ;;  %v764_v49 = vld [vmem:[#allocation6 + $0x270] sm:$0xff]  ;;  %v767_v51 = vld [vmem:[#allocation6 + $0x288] sm:$0xff] }
  0xd4   : > { %1900 = vmatpush1.bf16.msra.mxu0 %v1899_v55  ;;  %v2005_v55 = vpack.c.bf16 %v1115_v53, %v1113_v52  ;;  %2004 = vmatpush1.bf16.msra.mxu1 %v2003_v54  ;;  %v769_v52 = vld [vmem:[#allocation6 + $0x298] sm:$0xff]  ;;  %v1923_v54 = vpack.c.bf16 %v764_v49, %v762_v48 }
  0xd5   : > { %1902 = vmatprep.subr.bf16.mxu0 %v1901_v56  ;;  %v1112_v56 = vld [vmem:[%s2602_s18 + $0x100] sm:$0xff]  ;;  %v805_v48 = vld [vmem:[#allocation6 + $0x3b8] sm:$0xff] }
  0xd6   : > { %v2007_v60 = vpack.c.bf16 %v1114_v57, %v1112_v56  ;;  %2006 = vmatprep.subr.bf16.mxu1 %v2005_v55  ;;  %v1925_v55 = vpack.c.bf16 %v769_v52, %v767_v51  ;;  %v766_v56 = vld [vmem:[#allocation6 + $0x280] sm:$0xff]  ;;  %v768_v57 = vld [vmem:[#allocation6 + $0x290] sm:$0xff] }
  0xd7   : > { %v802_v51 = vld [vmem:[#allocation6 + $0x3a0] sm:$0xff]  ;;  %v804_v52 = vld [vmem:[#allocation6 + $0x3b0] sm:$0xff] }
  0xd8   : > { %1904 = vmatpush1.bf16.msra.mxu0 %v1903_v59  ;;  %v1119_v59 = vld [vmem:[%s2602_s18 + $0x138] sm:$0xff]  ;;  %2008 = vmatpush1.bf16.msra.mxu1 %v2007_v60  ;;  %v1927_v60 = vpack.c.bf16 %v768_v57, %v766_v56  ;;  %v530_v56 = vsub.s32 2, %v2666_v14 }
  0xd9   : > { %1906 = vmatprep.subr.bf16.mxu0 %v1905_v62  ;;  %v2009_v61 = vpack.c.bf16 %v1119_v59, %v1117_v58  ;;  %v1116_v62 = vld [vmem:[%s2602_s18 + $0x120] sm:$0xff]  ;;  %v771_v58 = vld [vmem:[#allocation6 + $0x2a8] sm:$0xff]  ;;  %v773_v59 = vld [vmem:[#allocation6 + $0x2b8] sm:$0xff] }
  0xda   : > { %v2011_v2 = vpack.c.bf16 %v1118_v63, %v1116_v62  ;;  %v770_v62 = vld [vmem:[#allocation6 + $0x2a0] sm:$0xff]  ;;  %v772_v63 = vld [vmem:[#allocation6 + $0x2b0] sm:$0xff] }
  0xdb   : > { %2010 = vmatprep.subr.bf16.mxu1 %v2009_v61  ;;  %v1929_v61 = vpack.c.bf16 %v773_v59, %v771_v58  ;;  %v806_v58 = vld [vmem:[#allocation6 + $0x3c0] sm:$0xff]  ;;  %v808_v59 = vld [vmem:[#allocation6 + $0x3d0] sm:$0xff] }
  0xdc   : > { %1908 = vmatpush1.bf16.msra.mxu0 %v1907_v1  ;;  %v1123_v1 = vld [vmem:[%s2602_s18 + $0x158] sm:$0xff]  ;;  %2012 = vmatpush1.bf16.msra.mxu1 %v2011_v2  ;;  %v1931_v2 = vpack.c.bf16 %v772_v63, %v770_v62  ;;  %v1967_v62 = vpack.c.bf16 %v808_v59, %v806_v58  ;;  %v531_v63 = vrot.slane %v2674_v16, %v530_v56 }
  0xdd   : > { %1910 = vmatprep.subr.bf16.mxu0 %v1909_v4  ;;  %v2013_v3 = vpack.c.bf16 %v1123_v1, %v1121_v0  ;;  %v1120_v4 = vld [vmem:[%s2602_s18 + $0x140] sm:$0xff]  ;;  %v775_v0 = vld [vmem:[#allocation6 + $0x2c8] sm:$0xff]  ;;  %v777_v1 = vld [vmem:[#allocation6 + $0x2d8] sm:$0xff] }
  0xde   : > { %v2015_v8 = vpack.c.bf16 %v1122_v5, %v1120_v4  ;;  %v774_v4 = vld [vmem:[#allocation6 + $0x2c0] sm:$0xff]  ;;  %v776_v5 = vld [vmem:[#allocation6 + $0x2d0] sm:$0xff]  ;;  %v1131_v16 = vld [vmem:[%s2602_s18 + $0x198] sm:$0xff] }
  0xdf   : > { %2014 = vmatprep.subr.bf16.mxu1 %v2013_v3  ;;  %v1933_v3 = vpack.c.bf16 %v777_v1, %v775_v0  ;;  %v810_v1 = vld [vmem:[#allocation6 + $0x3e0] sm:$0xff] }
  0xe0   : > { %2016 = vmatpush1.bf16.msra.mxu1 %v2015_v8  ;;  %v1935_v8 = vpack.c.bf16 %v776_v5, %v774_v4 }
  0xe1   : > { %2018 = vmatprep.subr.bf16.mxu1 %v2017_v9  ;;  %v1937_v9 = vpack.c.bf16 %v781_v7, %v779_v6  ;;  %v1129_v6 = vld [vmem:[%s2602_s18 + $0x188] sm:$0xff] }
  0xe2   : > { %v2021_v7 = vpack.c.bf16 %v1131_v16, %v1129_v6  ;;  %v1149_v6 = vld [vmem:[%s2602_s18 + $0x228] sm:$0xff] }
  0xe4   : > { %2020 = vmatpush1.bf16.msra.mxu1 %v2019_v13  ;;  %v785_v13 = vld [vmem:[#allocation6 + $0x318] sm:$0xff] }
  0xe5   : > { %2022 = vmatprep.subr.bf16.mxu1 %v2021_v7 }
 0x172   : > { %v606_v20 = vpop.f32.mrb[0].mxu0 }
 0x173   : > { %v607_v21 = vadd.f32 %v606_v20, %v523_v18  ;;  %v608_v22 = vpop.f32.mrb[1].mxu0  ;;  %v1939_v18 = vpack.c.bf16 %v780_v11, %v778_v10  ;;  %v782_v20 = vld [vmem:[#allocation6 + $0x300] sm:$0xff]  ;;  %v1133_v11 = vld [vmem:[%s2602_s18 + $0x1a8] sm:$0xff] }
 0x174   : > { %v609_v25 = vadd.f32 %v608_v22, %v527_v19  ;;  %v2685_v44 = vpop.f32.mrb[0].mxu1  ;;  %v1941_v19 = vpack.c.bf16 %v785_v13, %v783_v12  ;;  %v787_v22 = vld [vmem:[#allocation6 + $0x328] sm:$0xff]  ;;  %v1132_v13 = vld [vmem:[%s2602_s18 + $0x1a0] sm:$0xff] }
 0x175   : > { %v682_v30 = vmax.f32 %v607_v21, 0.0  ;;  %v679_v46 = vpop.f32.mrb[1].mxu1  ;;  %v784_v21 = vld [vmem:[#allocation6 + $0x310] sm:$0xff]  ;;  %v678_v4 = vadd.f32 %v2685_v44, %v531_v63  ;;  %v1135_v44 = vld [vmem:[%s2602_s18 + $0x1b8] sm:$0xff] }
 0x176   : > { %v683_v28 = vmax.f32 %v609_v25, 0.0  ;;  %v680_v50 = vadd.f32 %v679_v46, %v535_v41  ;;  %v1943_v24 = vpack.c.bf16 %v784_v21, %v782_v20  ;;  %v1945_v25 = vpack.c.bf16 %v789_v23, %v787_v22  ;;  %v801_v41 = vld [vmem:[#allocation6 + $0x398] sm:$0xff]  ;;  %v800_v46 = vld [vmem:[#allocation6 + $0x390] sm:$0xff]  ;;  %v1137_v20 = vld [vmem:[%s2602_s18 + $0x1c8] sm:$0xff] }
 0x177   : > { %v1957_v43 = vpack.c.bf16 %v801_v41, %v799_v40  ;;  %v684_v5 = vmax.f32 %v678_v4, 0.0  ;;  %v2025_v12 = vpack.c.bf16 %v1135_v44, %v1133_v11  ;;  %v1139_v21 = vld [vmem:[%s2602_s18 + $0x1d8] sm:$0xff]  ;;  %v1136_v23 = vld [vmem:[%s2602_s18 + $0x1c0] sm:$0xff]  ;;  %v1146_v4 = vld [vmem:[%s2602_s18 + $0x210] sm:$0xff] }
 0x178   : > { %890 = vmatprep.mubr.f32.mxu0 %v683_v28  ;;  %v685_v53 = vmax.f32 %v680_v50, 0.0  ;;  %v791_v28 = vld [vmem:[#allocation6 + $0x348] sm:$0xff]  ;;  %v2029_v22 = vpack.c.bf16 %v1139_v21, %v1137_v20  ;;  %v1148_v21 = vld [vmem:[%s2602_s18 + $0x220] sm:$0xff] }
 0x179   : > { %891 = vmatmul.mubr.f32.vlgmr.msra.gmra.mrb[2].mxu0 %v682_v30  ;;  %v1947_v30 = vpack.c.bf16 %v788_v27, %v786_v26  ;;  %v1141_v26 = vld [vmem:[%s2602_s18 + $0x1e8] sm:$0xff]  ;;  %v1143_v27 = vld [vmem:[%s2602_s18 + $0x1f8] sm:$0xff] }
 0x17a   : > { %1912 = vmatpush1.bf16.msra.mxu0 %v1911_v29  ;;  %961 = vmatprep.mubr.f32.mxu0 %v685_v53  ;;  %v793_v29 = vld [vmem:[#allocation6 + $0x358] sm:$0xff]  ;;  %v807_v53 = vld [vmem:[#allocation6 + $0x3c8] sm:$0xff] }
 0x17b   : > { %1914 = vmatprep.subr.bf16.mxu0 %v1913_v31  ;;  %v1949_v31 = vpack.c.bf16 %v793_v29, %v791_v28  ;;  %v1140_v28 = vld [vmem:[%s2602_s18 + $0x1e0] sm:$0xff]  ;;  %v2033_v29 = vpack.c.bf16 %v1143_v27, %v1141_v26 }
 0x17e   : > { %1916 = vmatpush1.bf16.msra.mxu0 %v1915_v37  ;;  %v1953_v37 = vpack.c.bf16 %v797_v35, %v795_v34  ;;  %v2037_v34 = vpack.c.bf16 %v1147_v33, %v1145_v32  ;;  %v2384_v35 = vmov 1983009808  }
 0x17f   : > { %1918 = vmatprep.subr.bf16.mxu0 %v1917_v38  ;;  %v794_v38 = vld [vmem:[#allocation6 + $0x360] sm:$0xff] }
 0x180   : > { %v1955_v42 = vpack.c.bf16 %v796_v39, %v794_v38  ;;  %v970_v38 = vld [vmem:[%s439_s28] sm:$0xf] }
 0x181   : > { %v814_v39 = vld [vmem:[%s2883_s5] sm:$0x3]  ;;  %v971_v40 = vmul.f32 0.31622776, %v970_v38 }
 0x182   : > { %1920 = vmatpush1.bf16.msra.mxu0 %v1919_v45  ;;  %v798_v45 = vld [vmem:[#allocation6 + $0x380] sm:$0xff] }
 0x183   : > { %1922 = vmatprep.subr.bf16.mxu0 %v1921_v47  ;;  %v803_v47 = vld [vmem:[#allocation6 + $0x3a8] sm:$0xff]  ;;  %v1959_v49 = vpack.c.bf16 %v800_v46, %v798_v45  ;;  %v819_v45 = vrot.slane %v814_v39, %v2669_v15 }
 0x184   : > { %v1961_v50 = vpack.c.bf16 %v805_v48, %v803_v47  ;;  %v823_v47 = vrot.slane %v814_v39, %v2677_v17 }
 0x186   : > { %1924 = vmatpush1.bf16.msra.mxu0 %v1923_v54  ;;  %v809_v54 = vld [vmem:[#allocation6 + $0x3d8] sm:$0xff] }
 0x187   : > { %1926 = vmatprep.subr.bf16.mxu0 %v1925_v55  ;;  %v1963_v55 = vpack.c.bf16 %v804_v52, %v802_v51  ;;  %v1965_v57 = vpack.c.bf16 %v809_v54, %v807_v53 }
 0x18a   : > { %1928 = vmatpush1.bf16.msra.mxu0 %v1927_v60  ;;  %v811_v60 = vld [vmem:[#allocation6 + $0x3e8] sm:$0xff] }
 0x18b   : > { %1930 = vmatprep.subr.bf16.mxu0 %v1929_v61  ;;  %v813_v61 = vld [vmem:[#allocation6 + $0x3f8] sm:$0xff] }
 0x18c   : > { %v1969_v0 = vpack.c.bf16 %v813_v61, %v811_v60 }
 0x18e   : > { %1932 = vmatpush1.bf16.msra.mxu0 %v1931_v2  ;;  %v812_v2 = vld [vmem:[#allocation6 + $0x3f0] sm:$0xff] }
 0x18f   : > { %1934 = vmatprep.subr.bf16.mxu0 %v1933_v3  ;;  %v1971_v3 = vpack.c.bf16 %v812_v2, %v810_v1  ;;  %v1144_v1 = vld [vmem:[%s2602_s18 + $0x200] sm:$0xff] }
 0x190   : > { %v2039_v11 = vpack.c.bf16 %v1146_v4, %v1144_v1  ;;  %v1181_v4 = vld [vmem:[%s2602_s18 + $0x328] sm:$0xff] }
 0x192   : > { %1936 = vmatpush1.bf16.msra.mxu0 %v1935_v8  ;;  %v1128_v8 = vld [vmem:[%s2602_s18 + $0x180] sm:$0xff] }
 0x193   : > { %1938 = vmatprep.subr.bf16.mxu0 %v1937_v9  ;;  %v1130_v9 = vld [vmem:[%s2602_s18 + $0x190] sm:$0xff] }
 0x194   : > { %v2023_v10 = vpack.c.bf16 %v1130_v9, %v1128_v8 }
 0x196   : > { %1940 = vmatpush1.bf16.msra.mxu0 %v1939_v18  ;;  %2024 = vmatpush1.bf16.msra.mxu1 %v2023_v10  ;;  %v1134_v18 = vld [vmem:[%s2602_s18 + $0x1b0] sm:$0xff] }
 0x197   : > { %1942 = vmatprep.subr.bf16.mxu0 %v1941_v19  ;;  %v2027_v19 = vpack.c.bf16 %v1134_v18, %v1132_v13  ;;  %2026 = vmatprep.subr.bf16.mxu1 %v2025_v12 }
 0x19a   : > { %1944 = vmatpush1.bf16.msra.mxu0 %v1943_v24  ;;  %2028 = vmatpush1.bf16.msra.mxu1 %v2027_v19  ;;  %v1138_v24 = vld [vmem:[%s2602_s18 + $0x1d0] sm:$0xff] }
 0x19b   : > { %1946 = vmatprep.subr.bf16.mxu0 %v1945_v25  ;;  %v2031_v25 = vpack.c.bf16 %v1138_v24, %v1136_v23  ;;  %2030 = vmatprep.subr.bf16.mxu1 %v2029_v22  ;;  %v1150_v22 = vld [vmem:[%s2602_s18 + $0x230] sm:$0xff]  ;;  %v1153_v24 = vld [vmem:[%s2602_s18 + $0x248] sm:$0xff] }
 0x19e   : > { %1948 = vmatpush1.bf16.msra.mxu0 %v1947_v30  ;;  %2032 = vmatpush1.bf16.msra.mxu1 %v2031_v25  ;;  %v1142_v30 = vld [vmem:[%s2602_s18 + $0x1f0] sm:$0xff]  ;;  %v1155_v25 = vld [vmem:[%s2602_s18 + $0x258] sm:$0xff] }
 0x19f   : > { %1950 = vmatprep.subr.bf16.mxu0 %v1949_v31  ;;  %v2035_v31 = vpack.c.bf16 %v1142_v30, %v1140_v28  ;;  %2034 = vmatprep.subr.bf16.mxu1 %v2033_v29  ;;  %v2045_v28 = vpack.c.bf16 %v1155_v25, %v1153_v24  ;;  %v1152_v29 = vld [vmem:[%s2602_s18 + $0x240] sm:$0xff]  ;;  %v1157_v30 = vld [vmem:[%s2602_s18 + $0x268] sm:$0xff]  ;;  %v1195_v24 = vld [vmem:[%s2602_s18 + $0x398] sm:$0xff] }
 0x1a2   : > { %1952 = vmatpush1.bf16.msra.mxu0 %v1951_v36  ;;  %2036 = vmatpush1.bf16.msra.mxu1 %v2035_v31  ;;  %v974_v36 = vunpack.c.l.s4 %v2384_v35  ;;  %v1159_v31 = vld [vmem:[%s2602_s18 + $0x278] sm:$0xff]  ;;  %v1158_v35 = vld [vmem:[%s2602_s18 + $0x270] sm:$0xff] }
 0x1a3   : > { %1954 = vmatprep.subr.bf16.mxu0 %v1953_v37  ;;  %2038 = vmatprep.subr.bf16.mxu1 %v2037_v34  ;;  %v2049_v33 = vpack.c.bf16 %v1159_v31, %v1157_v30  ;;  %v1156_v34 = vld [vmem:[%s2602_s18 + $0x260] sm:$0xff] }
 0x1a4   : > { %v975_v37 = vunpack.c.0.s8 %v974_v36  ;;  %v1161_v36 = vld [vmem:[%s2602_s18 + $0x288] sm:$0xff]  ;;  %v2051_v38 = vpack.c.bf16 %v1158_v35, %v1156_v34  ;;  %v1203_v35 = vld [vmem:[%s2602_s18 + $0x3d8] sm:$0xff] }
 0x1a5   : > { %v1201_v34 = vld [vmem:[%s2602_s18 + $0x3c8] sm:$0xff] }
 0x1a6   : > { %1956 = vmatpush1.bf16.msra.mxu0 %v1955_v42  ;;  %v2719_v41 = vsub.s32 %v975_v37, %v2666_v14  ;;  %v2385_v42 = vmov 1966171168   ;;  %v1163_v37 = vld [vmem:[%s2602_s18 + $0x298] sm:$0xff] }
 0x1a7   : > { %1958 = vmatprep.subr.bf16.mxu0 %v1957_v43  ;;  %v989_v43 = vunpack.c.l.s4 %v2385_v42  ;;  %v2053_v39 = vpack.c.bf16 %v1163_v37, %v1161_v36  ;;  %v1162_v42 = vld [vmem:[%s2602_s18 + $0x290] sm:$0xff]  ;;  %v2093_v37 = vpack.c.bf16 %v1203_v35, %v1201_v34 }
 0x1a8   : > { %v979_v46 = vrot.slane %v971_v40, %v2719_v41  ;;  %v1160_v40 = vld [vmem:[%s2602_s18 + $0x280] sm:$0xff] }
 0x1a9   : > { %v990_v48 = vunpack.c.0.s8 %v989_v43  ;;  %v1165_v43 = vld [vmem:[%s2602_s18 + $0x2a8] sm:$0xff] }
 0x1aa   : > { %1960 = vmatpush1.bf16.msra.mxu0 %v1959_v49  ;;  %v980_v53 = vcombine.high %v979_v46, %v979_v46 }
 0x1ab   : > { %1962 = vmatprep.subr.bf16.mxu0 %v1961_v50  ;;  %v993_v54 = vsub.s32 %v990_v48, %v2666_v14  ;;  %v1151_v14 = vld [vmem:[%s2602_s18 + $0x238] sm:$0xff]  ;;  %v1164_v48 = vld [vmem:[%s2602_s18 + $0x2a0] sm:$0xff] }
 0x1ac   : > { %v2041_v12 = vpack.c.bf16 %v1151_v14, %v1149_v6 }
 0x1ae   : > { %1964 = vmatpush1.bf16.msra.mxu0 %v1963_v55 }
 0x1af   : > { %1966 = vmatprep.subr.bf16.mxu0 %v1965_v57 }
 0x1b2   : > { %1968 = vmatpush1.bf16.msra.mxu0 %v1967_v62 }
 0x1b3   : > { %1970 = vmatprep.subr.bf16.mxu0 %v1969_v0 }
 0x1b6   : > { %1972 = vmatpush1.bf16.msra.mxu0 %v1971_v3 }
 0x1b9   : > { %962 = vmatmul.mubr.f32.vlgmr.msra.gmra.mrb[2].mxu0 %v684_v5 }
 0x28c   : > { %v963_v49 = vpop.f32.mrb[2].mxu0 }
 0x28d   : > { %v2101_v50 = vadd.f32 %v963_v49, %v819_v45  ;;  %v965_v51 = vpop.f32.mrb[3].mxu0  ;;  %v1167_v45 = vld [vmem:[%s2602_s18 + $0x2b8] sm:$0xff]  ;;  %v1166_v49 = vld [vmem:[%s2602_s18 + $0x2b0] sm:$0xff] }
 0x28e   : > { %v2102_v52 = vadd.f32 %v965_v51, %v823_v47  ;;  %v2057_v47 = vpack.c.bf16 %v1167_v45, %v1165_v43  ;;  %v1171_v51 = vld [vmem:[%s2602_s18 + $0x2d8] sm:$0xff] }
 0x28f   : > { %v968_v55 = vmul.f32 0.9486833, %v2101_v50 }
 0x290   : > { %v969_v56 = vmul.f32 0.9486833, %v2102_v52  ;;  %v987_v57 = vcombine.low %v2101_v50, %v2102_v52  ;;  %v1169_v50 = vld [vmem:[%s2602_s18 + $0x2c8] sm:$0xff]  ;;  %v2059_v52 = vpack.c.bf16 %v1166_v49, %v1164_v48 }
 0x291   : > { %v983_v58 = vadd.f32 %v979_v46, %v968_v55  ;;  %v2055_v46 = vpack.c.bf16 %v1162_v42, %v1160_v40  ;;  %v1170_v55 = vld [vmem:[%s2602_s18 + $0x2d0] sm:$0xff]  ;;  %v1205_v40 = vld [vmem:[%s2602_s18 + $0x3e8] sm:$0xff]  ;;  %v1207_v42 = vld [vmem:[%s2602_s18 + $0x3f8] sm:$0xff] }
 0x292   : > { %v984_v59 = vadd.f32 %v980_v53, %v969_v56  ;;  %v994_v60 = vrot.slane %v987_v57, %v993_v54  ;;  %v2061_v53 = vpack.c.bf16 %v1171_v51, %v1169_v50  ;;  %v1173_v56 = vld [vmem:[%s2602_s18 + $0x2e8] sm:$0xff]  ;;  %v1175_v57 = vld [vmem:[%s2602_s18 + $0x2f8] sm:$0xff]  ;;  %v2097_v45 = vpack.c.bf16 %v1207_v42, %v1205_v40 }
 0x294   : > { %v995_v61 = vcombine.high %v994_v60, %v994_v60  ;;  %v1012_v62 = vcombine.low %v983_v58, %v984_v59  ;;  %v1002_v63 = vrot.slane %v994_v60, %v993_v54  ;;  %v2065_v59 = vpack.c.bf16 %v1175_v57, %v1173_v56  ;;  %v1172_v60 = vld [vmem:[%s2602_s18 + $0x2e0] sm:$0xff] }
 0x296   : > { %v1019_v0 = vrot.slane %v1012_v62, %v993_v54  ;;  %v1009_v2 = vrot.slane %v995_v61, %v993_v54  ;;  %v1042_v16 = vrot.slane %v1002_v63, %v2677_v17  ;;  %v1038_v8 = vrot.slane %v1002_v63, %v2669_v15  ;;  %v1174_v61 = vld [vmem:[%s2602_s18 + $0x2f0] sm:$0xff]  ;;  %v1177_v62 = vld [vmem:[%s2602_s18 + $0x308] sm:$0xff]  ;;  %v1179_v63 = vld [vmem:[%s2602_s18 + $0x318] sm:$0xff] }
 0x297   : > { %v2069_v1 = vpack.c.bf16 %v1179_v63, %v1177_v62 }
 0x298   : > { %v1027_v3 = vrot.slane %v1019_v0, %v993_v54  ;;  %v1020_v5 = vcombine.high %v1019_v0, %v1019_v0  ;;  %v1050_v44 = vrot.slane %v1009_v2, %v2677_v17  ;;  %v1046_v13 = vrot.slane %v1009_v2, %v2669_v15  ;;  %v1176_v2 = vld [vmem:[%s2602_s18 + $0x300] sm:$0xff] }
 0x299   : > { %v2067_v0 = vpack.c.bf16 %v1174_v61, %v1172_v60 }
 0x29a   : > { %v1062_v7 = vrot.slane %v1027_v3, %v2677_v17  ;;  %v1058_v9 = vrot.slane %v1027_v3, %v2669_v15  ;;  %v1034_v10 = vrot.slane %v1020_v5, %v993_v54  ;;  %v1168_v54 = vld [vmem:[%s2602_s18 + $0x2c0] sm:$0xff]  ;;  %v1178_v3 = vld [vmem:[%s2602_s18 + $0x310] sm:$0xff]  ;;  %v1183_v5 = vld [vmem:[%s2602_s18 + $0x338] sm:$0xff] }
 0x29b   : > { %v2063_v58 = vpack.c.bf16 %v1170_v55, %v1168_v54  ;;  %v2071_v6 = vpack.c.bf16 %v1178_v3, %v1176_v2  ;;  %v2073_v14 = vpack.c.bf16 %v1183_v5, %v1181_v4  ;;  %v2803_v2 = vstv %s1356_s21 }
 0x29c   : > { %v1077_v18 = vsel %vm1075_vm0, %v1042_v16, %v1062_v7  ;;  %v1076_v19 = vsel %vm1075_vm0, %v1038_v8, %v1058_v9  ;;  %v1070_v20 = vrot.slane %v1034_v10, %v2677_v17  ;;  %v1066_v23 = vrot.slane %v1034_v10, %v2669_v15  ;;  %v1154_v15 = vld [vmem:[%s2602_s18 + $0x250] sm:$0xff]  ;;  %v1180_v16 = vld [vmem:[%s2602_s18 + $0x320] sm:$0xff]  ;;  %v1185_v8 = vld [vmem:[%s2602_s18 + $0x348] sm:$0xff] }
 0x29d   : > { %1272 = vmatprep.mubr.f32.mxu1 %v1077_v18  ;;  %v2043_v17 = vpack.c.bf16 %v1150_v22, %v1148_v21  ;;  %v2047_v32 = vpack.c.bf16 %v1154_v15, %v1152_v29  ;;  %v1182_v7 = vld [vmem:[%s2602_s18 + $0x330] sm:$0xff]  ;;  %v1187_v9 = vld [vmem:[%s2602_s18 + $0x358] sm:$0xff]  ;;  %v1188_v21 = vld [vmem:[%s2602_s18 + $0x360] sm:$0xff] }
 0x29e   : > { %1273 = vmatmul.mubr.f32.vlgmr.msra.gmra.mrb[2].mxu1 %v1076_v19  ;;  %v1079_v26 = vsel %vm1075_vm0, %v1050_v44, %v1070_v20  ;;  %v2745_v27 = vsel %vm1075_vm0, %v1046_v13, %v1066_v23  ;;  %v2075_v10 = vpack.c.bf16 %v1182_v7, %v1180_v16  ;;  %v1184_v44 = vld [vmem:[%s2602_s18 + $0x340] sm:$0xff]  ;;  %v1189_v13 = vld [vmem:[%s2602_s18 + $0x368] sm:$0xff]  ;;  %v1191_v18 = vld [vmem:[%s2602_s18 + $0x378] sm:$0xff] }
 0x29f   : > { %2040 = vmatpush1.bf16.msra.mxu1 %v2039_v11  ;;  %1343 = vmatprep.mubr.f32.mxu1 %v1079_v26  ;;  %v2077_v11 = vpack.c.bf16 %v1187_v9, %v1185_v8  ;;  %v2081_v20 = vpack.c.bf16 %v1191_v18, %v1189_v13  ;;  %v1190_v22 = vld [vmem:[%s2602_s18 + $0x370] sm:$0xff]  ;;  %v1193_v23 = vld [vmem:[%s2602_s18 + $0x388] sm:$0xff]  ;;  %v1199_v15 = vld [vmem:[%s2602_s18 + $0x3b8] sm:$0xff] }
 0x2a0   : > { %2042 = vmatprep.subr.bf16.mxu1 %v2041_v12  ;;  %v1186_v12 = vld [vmem:[%s2602_s18 + $0x350] sm:$0xff]  ;;  %v2083_v25 = vpack.c.bf16 %v1190_v22, %v1188_v21  ;;  %v2085_v26 = vpack.c.bf16 %v1195_v24, %v1193_v23  ;;  %v1197_v29 = vld [vmem:[%s2602_s18 + $0x3a8] sm:$0xff] }
 0x2a1   : > { %v2079_v19 = vpack.c.bf16 %v1186_v12, %v1184_v44  ;;  %v2089_v31 = vpack.c.bf16 %v1199_v15, %v1197_v29 }
 0x2a3   : > { %2044 = vmatpush1.bf16.msra.mxu1 %v2043_v17  ;;  %v1192_v17 = vld [vmem:[%s2602_s18 + $0x380] sm:$0xff] }
 0x2a4   : > { %2046 = vmatprep.subr.bf16.mxu1 %v2045_v28  ;;  %v1194_v28 = vld [vmem:[%s2602_s18 + $0x390] sm:$0xff] }
 0x2a5   : > { %v2087_v30 = vpack.c.bf16 %v1194_v28, %v1192_v17 }
 0x2a7   : > { %2048 = vmatpush1.bf16.msra.mxu1 %v2047_v32  ;;  %v1196_v32 = vld [vmem:[%s2602_s18 + $0x3a0] sm:$0xff] }
 0x2a8   : > { %2050 = vmatprep.subr.bf16.mxu1 %v2049_v33  ;;  %v1198_v33 = vld [vmem:[%s2602_s18 + $0x3b0] sm:$0xff] }
 0x2a9   : > { %v2091_v36 = vpack.c.bf16 %v1198_v33, %v1196_v32 }
 0x2ab   : > { %2052 = vmatpush1.bf16.msra.mxu1 %v2051_v38  ;;  %v1200_v38 = vld [vmem:[%s2602_s18 + $0x3c0] sm:$0xff] }
 0x2ac   : > { %2054 = vmatprep.subr.bf16.mxu1 %v2053_v39  ;;  %v1202_v39 = vld [vmem:[%s2602_s18 + $0x3d0] sm:$0xff] }
 0x2ad   : > { %v2095_v43 = vpack.c.bf16 %v1202_v39, %v1200_v38 }
 0x2af   : > { %2056 = vmatpush1.bf16.msra.mxu1 %v2055_v46  ;;  %v1204_v46 = vld [vmem:[%s2602_s18 + $0x3e0] sm:$0xff] }
 0x2b0   : > { %2058 = vmatprep.subr.bf16.mxu1 %v2057_v47  ;;  %v1206_v47 = vld [vmem:[%s2602_s18 + $0x3f0] sm:$0xff]  ;;  %s1355_s18 = scvt.s32.f32 %s1354_s10 }
 0x2b1   : > { %v2099_v48 = vpack.c.bf16 %v1206_v47, %v1204_v46 }
 0x2b2   : > { %s1390_s30 = smul.f32 1e-06, %s1355_s18 }
 0x2b3   : > { %2060 = vmatpush1.bf16.msra.mxu1 %v2059_v52 }
 0x2b4   : > { %2062 = vmatprep.subr.bf16.mxu1 %v2061_v53  ;;  %v2805_v3 = vstv %s1390_s30 }
 0x2b7   : > { %2064 = vmatpush1.bf16.msra.mxu1 %v2063_v58 }
 0x2b8   : > { %2066 = vmatprep.subr.bf16.mxu1 %v2065_v59 }
 0x2bb   : > { %2068 = vmatpush1.bf16.msra.mxu1 %v2067_v0 }
 0x2bc   : > { %2070 = vmatprep.subr.bf16.mxu1 %v2069_v1 }
 0x2bf   : > { %2072 = vmatpush1.bf16.msra.mxu1 %v2071_v6 }
 0x2c0   : > { %2074 = vmatprep.subr.bf16.mxu1 %v2073_v14 }
 0x2c3   : > { %2076 = vmatpush1.bf16.msra.mxu1 %v2075_v10 }
 0x2c4   : > { %2078 = vmatprep.subr.bf16.mxu1 %v2077_v11  ;;  %v2815_v11 = vld.sshfl [vmem:[%s444_s15] sm:$0x33 pattern:$0x76325410] }
 0x2c5   : > { %v2821_v21 = vcombine.high %v2815_v11, %v2815_v11 }
 0x2c7   : > { %2080 = vmatpush1.bf16.msra.mxu1 %v2079_v19 }
 0x2c8   : > { %2082 = vmatprep.subr.bf16.mxu1 %v2081_v20 }
 0x2cb   : > { %2084 = vmatpush1.bf16.msra.mxu1 %v2083_v25 }
 0x2cc   : > { %2086 = vmatprep.subr.bf16.mxu1 %v2085_v26 }
 0x2cf   : > { %2088 = vmatpush1.bf16.msra.mxu1 %v2087_v30 }
 0x2d0   : > { %2090 = vmatprep.subr.bf16.mxu1 %v2089_v31 }
 0x2d3   : > { %2092 = vmatpush1.bf16.msra.mxu1 %v2091_v36 }
 0x2d4   : > { %2094 = vmatprep.subr.bf16.mxu1 %v2093_v37 }
 0x2d7   : > { %2096 = vmatpush1.bf16.msra.mxu1 %v2095_v43 }
 0x2d8   : > { %2098 = vmatprep.subr.bf16.mxu1 %v2097_v45 }
 0x2db   : > { %2100 = vmatpush1.bf16.msra.mxu1 %v2099_v48 }
 0x2de   : > { %1344 = vmatmul.mubr.f32.vlgmr.msra.gmra.mrb[4].mxu1 %v2745_v27 }
 0x371   : > { %v1274_v49 = vpop.f32.mrb[2].mxu1 }
 0x372   : > { %v1766_v50 = vmul.f32 -0.999999, %v1274_v49  ;;  %v1770_v51 = vmul.f32 -1e-06, %v1274_v49  ;;  %v1276_v52 = vpop.f32.mrb[3].mxu1 }
 0x373   : > { %v1767_v53 = vmul.f32 -0.999999, %v1276_v52  ;;  %v1771_v54 = vmul.f32 -1e-06, %v1276_v52 }
 0x374   : > { %v1365_v55 = vmul.f32 1.442695, %v1766_v50  ;;  %v1399_v56 = vmul.f32 1.442695, %v1770_v51 }
 0x375   : > { %v1367_v57 = vmul.f32 1.442695, %v1767_v53  ;;  %v1401_v58 = vmul.f32 1.442695, %v1771_v54 }
 0x376   : > { %2175 = vpow2.f32 %v1365_v55 }
 0x377   : > { %2177 = vpow2.f32 %v1399_v56 }
 0x378   : > { %2179 = vpow2.f32 %v1367_v57 }
 0x379   : > { %2181 = vpow2.f32 %v1401_v58 }
 0x380   : > { %v2176_v59 = vpop.eup %2175 }
 0x381   : > { %v2178_v27 = vpop.eup %2177  ;;  %v1373_v60 = vadd.f32 1.0, %v2176_v59 }
 0x382   : > { %v2180_v61 = vpop.eup %2179  ;;  %v1407_v62 = vadd.f32 1.0, %v2178_v27 }
 0x383   : > { %v2182_v63 = vpop.eup %2181  ;;  %2183 = vrcp.f32 %v1373_v60  ;;  %v1374_v0 = vadd.f32 1.0, %v2180_v61 }
 0x384   : > { %2185 = vrcp.f32 %v1407_v62  ;;  %v1408_v1 = vadd.f32 1.0, %v2182_v63 }
 0x385   : > { %2187 = vrcp.f32 %v1374_v0 }
 0x386   : > { %2189 = vrcp.f32 %v1408_v1 }
 0x38d   : > { %v2184_v4 = vpop.eup %2183 }
 0x38e   : > { %v2186_v5 = vpop.eup %2185  ;;  %v1386_v6 = vmul.f32 %v2184_v4, %v2803_v2 }
 0x38f   : > { %v2188_v14 = vpop.eup %2187  ;;  %v1420_v16 = vmul.f32 %v2186_v5, %v2805_v3 }
 0x390   : > { %v2190_v7 = vpop.eup %2189  ;;  %v1387_v8 = vmul.f32 %v2188_v14, %v2803_v2 }
 0x391   : > { %v1424_v9 = vadd.f32 %v1420_v16, %v1386_v6  ;;  %v1421_v10 = vmul.f32 %v2190_v7, %v2805_v3 }
 0x393   : > { %v1428_v44 = vmul.f32 2.0, %v1424_v9  ;;  %v1436_v12 = vrot.slane %v1424_v9, 1  ;;  %v1425_v13 = vadd.f32 %v1421_v10, %v1387_v8 }
 0x395   : > { %v1429_v18 = vmul.f32 2.0, %v1425_v13  ;;  %v1437_v19 = vrot.slane %v1425_v13, 1  ;;  %v2817_v20 = vsub.f32 %v1428_v44, %v1436_v12  ;;  %v1497_v12 = vrot.slane %v2815_v11, 1 }
 0x397   : > { %v2823_v22 = vsub.f32 %v1429_v18, %v1437_v19  ;;  %v1484_v23 = vmax.f32 %v2817_v20, 0.0  ;;  %v1503_v24 = vmul.f32 %v2815_v11, %v2817_v20  ;;  %v1511_v25 = vand.u32 2147483647, %v2817_v20 }
 0x399   : > { %v1453_v26 = vcombine.low %v2817_v20, %v2823_v22  ;;  %v1485_v17 = vmax.f32 %v2823_v22, 0.0  ;;  %v1504_v28 = vmul.f32 %v2821_v21, %v2823_v22  ;;  %v1507_v29 = vsub.f32 %v1484_v23, %v1503_v24 }
 0x39a   : > { %v1512_v15 = vand.u32 2147483647, %v2823_v22  ;;  %v1515_v30 = vsub.f32 0.0, %v1511_v25  ;;  %v1498_v23 = vrot.slane %v2821_v21, 1 }
 0x39b   : > { %v1508_v31 = vsub.f32 %v1485_v17, %v1504_v28  ;;  %v1460_v21 = vrot.slane %v1453_v26, %v2719_v41 }
 0x39c   : > { %v1516_v32 = vsub.f32 0.0, %v1512_v15  ;;  %v1519_v33 = vmul.f32 1.442695, %v1515_v30 }
 0x39e   : > { %2191 = vpow2.f32 %v1519_v33  ;;  %v1521_v34 = vmul.f32 1.442695, %v1516_v32 }
 0x3a0   : > { %2193 = vpow2.f32 %v1521_v34 }
 0x3a8   : > { %v2192_v35 = vpop.eup %2191 }
 0x3a9   : > { %v1527_v36 = vadd.f32 1.0, %v2192_v35 }
 0x3aa   : > { %v2194_v37 = vpop.eup %2193 }
 0x3ab   : > { %v1528_v38 = vadd.f32 1.0, %v2194_v37  ;;  %2195 = vlog2.f32 %v1527_v36 }
 0x3ad   : > { %2197 = vlog2.f32 %v1528_v38 }
 0x3b1   : > { %v1345_v39 = vpop.f32.mrb[4].mxu1 }
 0x3b2   : > { %v1768_v40 = vmul.f32 -0.999999, %v1345_v39  ;;  %v1772_v42 = vmul.f32 -1e-06, %v1345_v39  ;;  %v1347_v43 = vpop.f32.mrb[5].mxu1 }
 0x3b3   : > { %v1769_v45 = vmul.f32 -0.999999, %v1347_v43  ;;  %v1773_v46 = vmul.f32 -1e-06, %v1347_v43 }
 0x3b4   : > { %v1369_v47 = vmul.f32 1.442695, %v1768_v40  ;;  %v1403_v48 = vmul.f32 1.442695, %v1772_v42 }
 0x3b5   : > { %v2196_v49 = vpop.eup %2195  ;;  %v1371_v50 = vmul.f32 1.442695, %v1769_v45  ;;  %v1405_v51 = vmul.f32 1.442695, %v1773_v46 }
 0x3b6   : > { %2199 = vpow2.f32 %v1369_v47  ;;  %v1532_v52 = vmul.f32 0.6931472, %v2196_v49 }
 0x3b7   : > { %v2198_v53 = vpop.eup %2197  ;;  %2201 = vpow2.f32 %v1403_v48 }
 0x3b8   : > { %2203 = vpow2.f32 %v1371_v50  ;;  %v1534_v54 = vmul.f32 0.6931472, %v2198_v53  ;;  %v2835_v55 = vadd.f32 %v1532_v52, %v1507_v29 }
 0x3b9   : > { %2205 = vpow2.f32 %v1405_v51 }
 0x3ba   : > { %v2837_v56 = vadd.f32 %v1534_v54, %v1508_v31  ;;  %v1543_v26 = vsub.f32 0.0, %v2835_v55 }
 0x3bc   : > { %v1544_v43 = vsub.f32 0.0, %v2837_v56  ;;  %v1547_v45 = vmul.f32 1.442695, %v1543_v26 }
 0x3be   : > { %v1549_v48 = vmul.f32 1.442695, %v1544_v43 }
 0x3c0   : > { %v2200_v57 = vpop.eup %2199 }
 0x3c1   : > { %v2202_v58 = vpop.eup %2201  ;;  %v1375_v59 = vadd.f32 1.0, %v2200_v57 }
 0x3c2   : > { %v2204_v27 = vpop.eup %2203  ;;  %v1409_v60 = vadd.f32 1.0, %v2202_v58 }
 0x3c3   : > { %v2206_v61 = vpop.eup %2205  ;;  %2207 = vrcp.f32 %v1375_v59  ;;  %v1376_v62 = vadd.f32 1.0, %v2204_v27 }
 0x3c4   : > { %2209 = vrcp.f32 %v1409_v60  ;;  %v1410_v63 = vadd.f32 1.0, %v2206_v61 }
 0x3c5   : > { %2211 = vrcp.f32 %v1376_v62 }
 0x3c6   : > { %2213 = vrcp.f32 %v1410_v63 }
 0x3cd   : > { %v2208_v0 = vpop.eup %2207 }
 0x3ce   : > { %v2210_v1 = vpop.eup %2209  ;;  %v1388_v4 = vmul.f32 %v2208_v0, %v2803_v2 }
 0x3cf   : > { %v2212_v5 = vpop.eup %2211  ;;  %v1422_v6 = vmul.f32 %v2210_v1, %v2805_v3 }
 0x3d0   : > { %v2214_v14 = vpop.eup %2213  ;;  %v1389_v16 = vmul.f32 %v2212_v5, %v2803_v2 }
 0x3d1   : > { %v1426_v7 = vadd.f32 %v1422_v6, %v1388_v4  ;;  %v1423_v8 = vmul.f32 %v2214_v14, %v2805_v3 }
 0x3d3   : > { %v1430_v9 = vmul.f32 2.0, %v1426_v7  ;;  %v1438_v10 = vrot.slane %v1426_v7, 1  ;;  %v1427_v44 = vadd.f32 %v1423_v8, %v1389_v16 }
 0x3d5   : > { %v1431_v13 = vmul.f32 2.0, %v1427_v44  ;;  %v1439_v18 = vrot.slane %v1427_v44, 1  ;;  %v1446_v19 = vsub.f32 %v1430_v9, %v1438_v10 }
 0x3d7   : > { %v1447_v24 = vsub.f32 %v1431_v13, %v1439_v18  ;;  %v1486_v25 = vmax.f32 %v1446_v19, 0.0  ;;  %v1505_v17 = vmul.f32 %v1497_v12, %v1446_v19  ;;  %v1513_v28 = vand.u32 2147483647, %v1446_v19 }
 0x3d9   : > { %v1461_v29 = vcombine.low %v1446_v19, %v1447_v24  ;;  %v1487_v15 = vmax.f32 %v1447_v24, 0.0  ;;  %v1506_v2 = vmul.f32 %v1498_v23, %v1447_v24  ;;  %v1509_v30 = vsub.f32 %v1486_v25, %v1505_v17 }
 0x3da   : > { %v1514_v3 = vand.u32 2147483647, %v1447_v24  ;;  %v1517_v31 = vsub.f32 0.0, %v1513_v28 }
 0x3db   : > { %v1468_v32 = vrot.slane %v1461_v29, %v2719_v41  ;;  %v1510_v33 = vsub.f32 %v1487_v15, %v1506_v2 }
 0x3dc   : > { %v1518_v11 = vsub.f32 0.0, %v1514_v3  ;;  %v1523_v34 = vmul.f32 1.442695, %v1517_v31 }
 0x3dd   : > { %v1473_v35 = vrot.slane %v1468_v32, 7 }
 0x3de   : > { %2215 = vpow2.f32 %v1523_v34  ;;  %v1525_v36 = vmul.f32 1.442695, %v1518_v11 }
 0x3df   : > { %v1475_v37 = vsel %vm1474_vm1, %v1473_v35, %v1460_v21 }
 0x3e0   : > { %v1477_v38 = vsel %vm1476_vm2, %v1473_v35, %v1475_v37  ;;  %2217 = vpow2.f32 %v1525_v36 }
 0x3e1   : > { %v1479_v39 = vsel %vm1478_vm3, %v1473_v35, %v1477_v38 }
 0x3e2   : > { %v1481_v40 = vsel %vm1480_vm4, %v1473_v35, %v1479_v39 }
 0x3e3   : > { %1483 = vst [vmem:[%s449_s12] sm:$0xf] %v1481_v40 }
 0x3e8   : > { %v2216_v42 = vpop.eup %2215 }
 0x3e9   : > { %v1529_v20 = vadd.f32 1.0, %v2216_v42 }
 0x3ea   : > { %v2218_v41 = vpop.eup %2217 }
 0x3eb   : > { %v1530_v22 = vadd.f32 1.0, %v2218_v41  ;;  %2219 = vlog2.f32 %v1529_v20 }
 0x3ed   : > { %2221 = vlog2.f32 %v1530_v22 }
 0x3ee   : > { %2223 = vpow2.f32 %v1547_v45 }
 0x3ef   : > { %2225 = vpow2.f32 %v1549_v48 }
 0x3f5   : > { %v2220_v46 = vpop.eup %2219 }
 0x3f6   : > { %v1536_v47 = vmul.f32 0.6931472, %v2220_v46 }
 0x3f7   : > { %v2222_v49 = vpop.eup %2221 }
 0x3f8   : > { %v1538_v50 = vmul.f32 0.6931472, %v2222_v49  ;;  %v1541_v51 = vadd.f32 %v1536_v47, %v1509_v30  ;;  %v2224_v59 = vpop.eup %2223 }
 0x3f9   : > { %v2226_v27 = vpop.eup %2225  ;;  %v1555_v60 = vsub.f32 1.0, %v2224_v59 }
 0x3fa   : > { %v1542_v52 = vadd.f32 %v1538_v50, %v1510_v33  ;;  %v1545_v53 = vsub.f32 0.0, %v1541_v51  ;;  %v1556_v61 = vsub.f32 1.0, %v2226_v27 }
 0x3fb   : > { %v1559_v0 = vmul.f32 %v1555_v60, %v1555_v60 }
 0x3fc   : > { %v1546_v54 = vsub.f32 0.0, %v1542_v52  ;;  %v1551_v57 = vmul.f32 1.442695, %v1545_v53  ;;  %v1560_v5 = vmul.f32 %v1556_v61, %v1556_v61 }
 0x3fd   : > { %v1563_v16 = vmul.f32 0.25, %v1559_v0 }
 0x3fe   : > { %2227 = vpow2.f32 %v1551_v57  ;;  %v1553_v58 = vmul.f32 1.442695, %v1546_v54  ;;  %v1564_v8 = vmul.f32 0.25, %v1560_v5 }
 0x3ff   : > { %v1567_v44 = vmul.f32 %v1563_v16, %v2835_v55 }
 0x400   : > { %2229 = vpow2.f32 %v1553_v58  ;;  %v1568_v18 = vmul.f32 %v1564_v8, %v2837_v56 }
 0x408   : > { %v2228_v62 = vpop.eup %2227 }
 0x409   : > { %v1557_v63 = vsub.f32 1.0, %v2228_v62 }
 0x40a   : > { %v2230_v1 = vpop.eup %2229 }
 0x40b   : > { %v1558_v4 = vsub.f32 1.0, %v2230_v1  ;;  %v1561_v6 = vmul.f32 %v1557_v63, %v1557_v63 }
 0x40d   : > { %v1562_v14 = vmul.f32 %v1558_v4, %v1558_v4  ;;  %v1565_v7 = vmul.f32 0.25, %v1561_v6 }
 0x40f   : > { %v1566_v9 = vmul.f32 0.25, %v1562_v14  ;;  %v1569_v10 = vmul.f32 %v1565_v7, %v1541_v51 }
 0x411   : > { %v1570_v12 = vmul.f32 %v1566_v9, %v1542_v52  ;;  %v1575_v13 = vrot.slane %v1569_v10, 7 }
 0x413   : > { %v1576_v19 = vsel %vm1474_vm1, %v1575_v13, %v1567_v44  ;;  %v1577_v23 = vrot.slane %v1570_v12, 7 }
 0x414   : > { %v1582_v24 = vsel %vm1581_vm5, %v1576_v19, 0.0 }
 0x415   : > { %v1578_v25 = vsel %vm1474_vm1, %v1577_v23, %v1568_v18 }
 0x416   : > { %v1583_v17 = vsel %vm1581_vm5, %v1578_v25, 0.0 }
 0x417   : > { %v1584_v28 = vadd.f32 %v1583_v17, %v1582_v24 }
 0x419   : > { %1585 = vadd.xlane.f32.xlu0 %v1584_v28 }
 0x4a6   : > { %v1586_v29 = vpop.xlane.xlu0 %1585 }
 0x4a7   : > { %v1587_v15 = vrot.slane %v1586_v29, 4 }
 0x4a9   : > { %v1588_v2 = vadd.f32 %v1587_v15, %v1586_v29 }
 0x4ab   : > { %v1589_v30 = vrot.slane %v1588_v2, 2 }
 0x4ad   : > { %v1590_v55 = vadd.f32 %v1589_v30, %v1588_v2 }
 0x4af   : > { %v1591_v3 = vrot.slane %v1590_v55, 1 }
 0x4b1   : > { %v1592_v31 = vadd.f32 %v1591_v3, %v1590_v55 }
 0x4b3   : > { %2105 = vpush %v1592_v31 }
 0x4e4   : > { %s2106_s24 = spop %2105 }
 0x4e5   : > { %s1596_s17 = smul.f32 0.001953125, %s2106_s24 }
 0x4e7   : > { %v1597_v56 = vstv %s1596_s17 }
 0x4e8   : > { %1598 = vst [vmem:[%s452_s16] sm:$0x1] %v1597_v56 }
 0x4e9 PF: > { %s2910_s20 = sld [smem:[#allocation13_spill]]  ;;  %s2911_s11 = sld [smem:[#allocation14_spill]] }
 0x4ea   : > { %s2912_s18 = smov %s2365_s19  ;;  %s2913_s19 = smov %s2369_s0 }
 0x4ef   : > { %p26_p12 = scmp.ge.s32.totalorder %s2910_s20, 4   ;;  %s2914_s0 = smov %s2911_s11 }
 0x4f1   :  { %28 = sbr.rel (!%p26_p12) target bundleno = 18 (0x12), region = 120 }
 0x4f8   :  { %1632 = vsyncpa [#allocation5], 1 }
 0x4f9   :  { %1634 = vsyncpa [#allocation5 + $0x1], 1 }
 0x4fa   :  { %1635 = vsyncpa [#allocation7], 1 }

</bundles_post_ra>
